<compile_context>
chip_gen: v7x
topology: tpu7x:2x2x1
jax: 0.10.0
libtpu: 0.0.40
codegen_flags: <defaults>
</compile_context>

<pallas_src>
import jax
import jax.numpy as jnp
from jax import lax
from jax.experimental import pallas as pl
from jax.experimental.pallas import tpu as pltpu


def _lrelu(x, slope=0.2):
    return jnp.where(x >= 0, x, slope * x)


def _make_kernel(nf, gc, l_tile, halo, seq_len):
    w_win = l_tile + 2 * halo
    cins = [nf + i * gc for i in range(5)]

    def _shift_p1(a):  # out[:, l] = a[:, l-1]
        zcol = jnp.zeros((a.shape[0], 1), a.dtype)
        return jnp.concatenate([zcol, a[:, :-1]], axis=1)

    def _shift_m1(a):  # out[:, l] = a[:, l+1]
        zcol = jnp.zeros((a.shape[0], 1), a.dtype)
        return jnp.concatenate([a[:, 1:], zcol], axis=1)

    def kernel(x_ref, w1, b1, w2, b2, w3, b3, w4, b4, w5, b5, o_ref, f_ref):
        wrefs = (w1, w2, w3, w4, w5)
        brefs = (b1, b2, b3, b4, b5)
        j = pl.program_id(1)

        xw = x_ref[0, 0]                                    # (nf, W) f32
        f_ref[:nf, :] = xw.astype(jnp.bfloat16)

        # Columns whose global position is outside the true sequence must hold
        # zero in every feature map (reproduces each conv's own zero padding at
        # the true sequence boundary).
        col = lax.broadcasted_iota(jnp.int32, (1, w_win), 1)
        gpos = col + (j * l_tile - halo)
        valid = jnp.logical_and(gpos >= 0, gpos < seq_len)   # (1, W) bool

        def conv_k3(cin, cout, w_ref, b_ref):
            f = f_ref[:cin, :]                               # (cin, W) bf16
            y3 = jnp.dot(w_ref[...], f,
                         preferred_element_type=jnp.float32)  # (3*cout, W) f32
            y = (_shift_p1(y3[:cout, :]) + y3[cout:2 * cout, :]
                 + _shift_m1(y3[2 * cout:, :]))
            return y + b_ref[...]

        off = nf
        for i in range(4):
            y = _lrelu(conv_k3(cins[i], gc, wrefs[i], brefs[i]))
            y = jnp.where(valid, y, 0.0)
            f_ref[off:off + gc, :] = y.astype(jnp.bfloat16)
            off += gc

        # conv5: the 0.2 residual scale is pre-folded into w5/b5 in the wrapper.
        y5 = conv_k3(cins[4], nf, wrefs[4], brefs[4])        # (nf, W) f32
        o_ref[0] = (y5[:, halo:halo + l_tile]
                    + xw[:, halo:halo + l_tile]).astype(o_ref.dtype)

    return kernel


def residual_dense_block_5c(x_ncl, params, *, l_tile=128, halo=8):
    """x_ncl: (N, nf, L) float32, PyTorch NCL layout. Returns (N, nf, L)."""
    N, nf, L = x_ncl.shape
    gc = params["w1"].shape[2]
    assert halo >= 5, "need >= 5-column halo for 5 stacked k=3 convolutions"

    n_tiles = -(-L // l_tile)
    l_pad = n_tiles * l_tile
    w_win = l_tile + 2 * halo

    # Overlapping halo'd windows, built once: (N, T, nf, W).  Out-of-range
    # columns are zero (true-sequence zero padding).
    xp = jnp.pad(x_ncl, ((0, 0), (0, 0), (halo, l_pad - L + halo)))
    idx = jnp.arange(n_tiles)[:, None] * l_tile + jnp.arange(w_win)[None, :]
    x_win = jnp.transpose(xp[:, :, idx], (0, 2, 1, 3))       # (N, T, nf, W)

    cins = [nf + i * gc for i in range(5)]
    couts = [gc, gc, gc, gc, nf]

    ins = [x_win]
    in_specs = [pl.BlockSpec((1, 1, nf, w_win), lambda b, j: (b, j, 0, 0))]
    for i in range(5):
        w = params[f"w{i + 1}"]                 # (3, cin, cout)
        b = params[f"b{i + 1}"]                 # (1, cout)
        # tap-fused, transposed weight: (3*cout, cin), rows grouped by tap k.
        wt = jnp.transpose(w, (0, 2, 1)).reshape(3 * couts[i], cins[i])
        bb = b.reshape(couts[i], 1).astype(jnp.float32)
        if i == 4:                              # fold the 0.2 residual scale
            wt = wt * 0.2
            bb = bb * 0.2
        wt = wt.astype(jnp.bfloat16)
        ins += [wt, bb]
        in_specs += [pl.BlockSpec(wt.shape, lambda b_, j_: (0, 0)),
                     pl.BlockSpec(bb.shape, lambda b_, j_: (0, 0))]

    c_tot = nf + 4 * gc
    c_pad = -(-c_tot // 16) * 16                # bf16 sublane packing

    kernel = _make_kernel(nf, gc, l_tile, halo, L)
    out = pl.pallas_call(
        kernel,
        out_shape=jax.ShapeDtypeStruct((N, nf, l_pad), x_ncl.dtype),
        grid=(N, n_tiles),
        in_specs=in_specs,
        out_specs=pl.BlockSpec((1, nf, l_tile), lambda b, j: (b, 0, j)),
        scratch_shapes=[pltpu.VMEM((c_pad, w_win), jnp.bfloat16)],
        compiler_params=pltpu.CompilerParams(
            dimension_semantics=("parallel", "parallel")),
    )(*ins)
    return out[:, :, :L]


def ref_forward(x_ncl, params):
    """Pure-JAX f32 reference matching the PyTorch module semantics."""
    def conv(v, w_kio, b):
        w_oik = jnp.transpose(w_kio, (2, 1, 0))  # (Cout, Cin, K) == PyTorch layout
        y = lax.conv_general_dilated(
            v, w_oik, window_strides=(1,), padding=[(1, 1)],
            dimension_numbers=("NCH", "OIH", "NCH"))
        return y + b.reshape(1, -1, 1)

    x = x_ncl
    x1 = _lrelu(conv(x, params["w1"], params["b1"]))
    x2 = _lrelu(conv(jnp.concatenate([x, x1], 1), params["w2"], params["b2"]))
    x3 = _lrelu(conv(jnp.concatenate([x, x1, x2], 1), params["w3"], params["b3"]))
    x4 = _lrelu(conv(jnp.concatenate([x, x1, x2, x3], 1), params["w4"], params["b4"]))
    x5 = conv(jnp.concatenate([x, x1, x2, x3, x4], 1), params["w5"], params["b5"])
    return x5 * 0.2 + x


if __name__ == "__main__":
    # Small shapes consistent with the module: nf=32, gc=16, batch=2, L=200
    # (L not a multiple of the tile to exercise padding/masking; 2 L-tiles to
    # exercise the halo between tiles).
    N, nf, gc, L = 2, 32, 16, 200
    key = jax.random.PRNGKey(0)
    keys = jax.random.split(key, 11)

    cins = [nf, nf + gc, nf + 2 * gc, nf + 3 * gc, nf + 4 * gc]
    couts = [gc, gc, gc, gc, nf]
    params = {}
    for i in range(5):
        # weights stored as (K=3, Cin, Cout); biases as (1, Cout)
        params[f"w{i + 1}"] = 0.1 * jax.random.normal(
            keys[2 * i], (3, cins[i], couts[i]), jnp.float32)
        params[f"b{i + 1}"] = 0.1 * jax.random.normal(
            keys[2 * i + 1], (1, couts[i]), jnp.float32)

    x = jax.random.normal(keys[10], (N, nf, L), jnp.float32)  # PyTorch NCL input

    out = residual_dense_block_5c(x, params, l_tile=128, halo=8)
    out = jax.block_until_ready(out)

    ref = ref_forward(x, params)
    assert out.shape == x.shape
    max_err = jnp.max(jnp.abs(out - ref))
    # bf16 MXU inputs (f32 accumulation) => loosened tolerance vs f32 reference.
    assert jnp.allclose(out, ref, atol=2e-2, rtol=2e-2), f"max abs err {max_err}"
    print("KERNEL_OK")
</pallas_src>

<mosaic_0001>
module attributes {stable_mosaic.version = 11 : i64} {
  func.func @kernel(%arg0: i32, %arg1: i32, %arg2: memref<1x1x32x144xf32, #tpu.memory_space<vmem>>, %arg3: memref<48x32xbf16, #tpu.memory_space<vmem>>, %arg4: memref<16x1xf32, #tpu.memory_space<vmem>>, %arg5: memref<48x48xbf16, #tpu.memory_space<vmem>>, %arg6: memref<16x1xf32, #tpu.memory_space<vmem>>, %arg7: memref<48x64xbf16, #tpu.memory_space<vmem>>, %arg8: memref<16x1xf32, #tpu.memory_space<vmem>>, %arg9: memref<48x80xbf16, #tpu.memory_space<vmem>>, %arg10: memref<16x1xf32, #tpu.memory_space<vmem>>, %arg11: memref<96x96xbf16, #tpu.memory_space<vmem>>, %arg12: memref<32x1xf32, #tpu.memory_space<vmem>>, %arg13: memref<1x32x128xf32, #tpu.memory_space<vmem>>, %arg14: memref<96x144xbf16, #tpu.memory_space<vmem>>) attributes {dimension_semantics = [#tpu.dimension_semantics<parallel>, #tpu.dimension_semantics<parallel>], iteration_bounds = array<i64: 2, 2>, scalar_prefetch = 0 : i64, scratch_operands = 1 : i64, tpu.core_type = #tpu.core_type<tc>, window_params = [{transform_indices = @transform_0, window_bounds = array<i64: 1, 1, 32, 144>}, {pipeline_mode = #tpu.pipeline_mode<synchronous>, transform_indices = @transform_1, window_bounds = array<i64: 48, 32>}, {pipeline_mode = #tpu.pipeline_mode<synchronous>, transform_indices = @transform_2, window_bounds = array<i64: 16, 1>}, {pipeline_mode = #tpu.pipeline_mode<synchronous>, transform_indices = @transform_3, window_bounds = array<i64: 48, 48>}, {pipeline_mode = #tpu.pipeline_mode<synchronous>, transform_indices = @transform_4, window_bounds = array<i64: 16, 1>}, {pipeline_mode = #tpu.pipeline_mode<synchronous>, transform_indices = @transform_5, window_bounds = array<i64: 48, 64>}, {pipeline_mode = #tpu.pipeline_mode<synchronous>, transform_indices = @transform_6, window_bounds = array<i64: 16, 1>}, {pipeline_mode = #tpu.pipeline_mode<synchronous>, transform_indices = @transform_7, window_bounds = array<i64: 48, 80>}, {pipeline_mode = #tpu.pipeline_mode<synchronous>, transform_indices = @transform_8, window_bounds = array<i64: 16, 1>}, {pipeline_mode = #tpu.pipeline_mode<synchronous>, transform_indices = @transform_9, window_bounds = array<i64: 96, 96>}, {pipeline_mode = #tpu.pipeline_mode<synchronous>, transform_indices = @transform_10, window_bounds = array<i64: 32, 1>}, {transform_indices = @transform_11, window_bounds = array<i64: 1, 32, 128>}]} {
    %c0 = arith.constant 0 : index
    %c0_0 = arith.constant 0 : index
    %c0_1 = arith.constant 0 : index
    %c0_2 = arith.constant 0 : index
    %0 = vector.load %arg2[%c0, %c0_0, %c0_1, %c0_2] : memref<1x1x32x144xf32, #tpu.memory_space<vmem>>, vector<1x1x32x144xf32>
    %1 = vector.shape_cast %0 : vector<1x1x32x144xf32> to vector<32x144xf32>
    %2 = arith.truncf %1 : vector<32x144xf32> to vector<32x144xbf16>
    %c0_3 = arith.constant 0 : index
    %c0_4 = arith.constant 0 : index
    %3 = vector.load %arg14[%c0_3, %c0_4] : memref<96x144xbf16, #tpu.memory_space<vmem>>, vector<32x144xbf16>
    tpu.vector_store %arg14[%c0_3, %c0_4], %2 {strides = array<i32>} : memref<96x144xbf16, #tpu.memory_space<vmem>>, vector<32x144xbf16>,
    %4 = tpu.iota {dimensions = array<i32: 1>} : vector<1x144xi32>
    %c128_i32 = arith.constant 128 : i32
    %5 = arith.muli %arg1, %c128_i32 : i32
    %c8_i32 = arith.constant 8 : i32
    %6 = arith.subi %5, %c8_i32 : i32
    %7 = vector.broadcast %6 : i32 to vector<1x144xi32>
    %8 = arith.addi %4, %7 : vector<1x144xi32>
    %c0_i32 = arith.constant 0 : i32
    %9 = vector.broadcast %c0_i32 : i32 to vector<1x144xi32>
    %10 = arith.cmpi sge, %8, %9 : vector<1x144xi32>
    %c200_i32 = arith.constant 200 : i32
    %11 = vector.broadcast %c200_i32 : i32 to vector<1x144xi32>
    %12 = arith.cmpi slt, %8, %11 : vector<1x144xi32>
    %13 = arith.andi %10, %12 : vector<1x144xi1>
    %c0_5 = arith.constant 0 : index
    %c0_6 = arith.constant 0 : index
    %14 = vector.load %arg14[%c0_5, %c0_6] : memref<96x144xbf16, #tpu.memory_space<vmem>>, vector<32x144xbf16>
    %c0_7 = arith.constant 0 : index
    %c0_8 = arith.constant 0 : index
    %15 = vector.load %arg3[%c0_7, %c0_8] : memref<48x32xbf16, #tpu.memory_space<vmem>>, vector<48x32xbf16>
    %cst = arith.constant dense<0.000000e+00> : vector<48x144xf32>
    %16 = tpu.matmul %15, %14, %cst {dimension_numbers = #tpu.dot_dimension_numbers<[1], [0], [0], [1], [0, 0, 1, 1], [], []>} : vector<48x32xbf16>, vector<32x144xbf16>, vector<48x144xf32> -> vector<48x144xf32>
    %17 = vector.extract_strided_slice %16 {offsets = [0, 0], sizes = [16, 144], strides = [1, 1]} : vector<48x144xf32> to vector<16x144xf32>
    %cst_9 = arith.constant 0.000000e+00 : f32
    %18 = vector.broadcast %cst_9 : f32 to vector<16x1xf32>
    %19 = vector.extract_strided_slice %17 {offsets = [0, 0], sizes = [16, 143], strides = [1, 1]} : vector<16x144xf32> to vector<16x143xf32>
    %20 = tpu.concatenate %18, %19 in 1 : vector<16x1xf32>, vector<16x143xf32> -> vector<16x144xf32>
    %21 = vector.extract_strided_slice %16 {offsets = [16, 0], sizes = [16, 144], strides = [1, 1]} : vector<48x144xf32> to vector<16x144xf32>
    %22 = arith.addf %20, %21 : vector<16x144xf32>
    %23 = vector.extract_strided_slice %16 {offsets = [32, 0], sizes = [16, 144], strides = [1, 1]} : vector<48x144xf32> to vector<16x144xf32>
    %cst_10 = arith.constant 0.000000e+00 : f32
    %24 = vector.broadcast %cst_10 : f32 to vector<16x1xf32>
    %25 = vector.extract_strided_slice %23 {offsets = [0, 1], sizes = [16, 143], strides = [1, 1]} : vector<16x144xf32> to vector<16x143xf32>
    %26 = tpu.concatenate %25, %24 in 1 : vector<16x143xf32>, vector<16x1xf32> -> vector<16x144xf32>
    %27 = arith.addf %22, %26 : vector<16x144xf32>
    %c0_11 = arith.constant 0 : index
    %c0_12 = arith.constant 0 : index
    %28 = vector.load %arg4[%c0_11, %c0_12] : memref<16x1xf32, #tpu.memory_space<vmem>>, vector<16x1xf32>
    %29 = vector.broadcast %28 : vector<16x1xf32> to vector<16x144xf32>
    %30 = arith.addf %27, %29 : vector<16x144xf32>
    %cst_13 = arith.constant 0.000000e+00 : f32
    %31 = vector.broadcast %cst_13 : f32 to vector<16x144xf32>
    %32 = arith.cmpf oge, %30, %31 : vector<16x144xf32>
    %cst_14 = arith.constant 2.000000e-01 : f32
    %33 = vector.broadcast %cst_14 : f32 to vector<16x144xf32>
    %34 = arith.mulf %33, %30 : vector<16x144xf32>
    %35 = arith.select %32, %30, %34 : vector<16x144xi1>, vector<16x144xf32>
    %cst_15 = arith.constant 0.000000e+00 : f32
    %36 = vector.shape_cast %13 : vector<1x144xi1> to vector<1x144xi1>
    %37 = vector.broadcast %36 : vector<1x144xi1> to vector<16x144xi1>
    %38 = vector.broadcast %cst_15 : f32 to vector<16x144xf32>
    %39 = arith.select %37, %35, %38 : vector<16x144xi1>, vector<16x144xf32>
    %40 = arith.truncf %39 : vector<16x144xf32> to vector<16x144xbf16>
    %c32 = arith.constant 32 : index
    %c0_16 = arith.constant 0 : index
    %41 = vector.load %arg14[%c32, %c0_16] : memref<96x144xbf16, #tpu.memory_space<vmem>>, vector<16x144xbf16>
    tpu.vector_store %arg14[%c32, %c0_16], %40 {strides = array<i32>} : memref<96x144xbf16, #tpu.memory_space<vmem>>, vector<16x144xbf16>,
    %c0_17 = arith.constant 0 : index
    %c0_18 = arith.constant 0 : index
    %42 = vector.load %arg14[%c0_17, %c0_18] : memref<96x144xbf16, #tpu.memory_space<vmem>>, vector<48x144xbf16>
    %c0_19 = arith.constant 0 : index
    %c0_20 = arith.constant 0 : index
    %43 = vector.load %arg5[%c0_19, %c0_20] : memref<48x48xbf16, #tpu.memory_space<vmem>>, vector<48x48xbf16>
    %cst_21 = arith.constant dense<0.000000e+00> : vector<48x144xf32>
    %44 = tpu.matmul %43, %42, %cst_21 {dimension_numbers = #tpu.dot_dimension_numbers<[1], [0], [0], [1], [0, 0, 1, 1], [], []>} : vector<48x48xbf16>, vector<48x144xbf16>, vector<48x144xf32> -> vector<48x144xf32>
    %45 = vector.extract_strided_slice %44 {offsets = [0, 0], sizes = [16, 144], strides = [1, 1]} : vector<48x144xf32> to vector<16x144xf32>
    %cst_22 = arith.constant 0.000000e+00 : f32
    %46 = vector.broadcast %cst_22 : f32 to vector<16x1xf32>
    %47 = vector.extract_strided_slice %45 {offsets = [0, 0], sizes = [16, 143], strides = [1, 1]} : vector<16x144xf32> to vector<16x143xf32>
    %48 = tpu.concatenate %46, %47 in 1 : vector<16x1xf32>, vector<16x143xf32> -> vector<16x144xf32>
    %49 = vector.extract_strided_slice %44 {offsets = [16, 0], sizes = [16, 144], strides = [1, 1]} : vector<48x144xf32> to vector<16x144xf32>
    %50 = arith.addf %48, %49 : vector<16x144xf32>
    %51 = vector.extract_strided_slice %44 {offsets = [32, 0], sizes = [16, 144], strides = [1, 1]} : vector<48x144xf32> to vector<16x144xf32>
    %cst_23 = arith.constant 0.000000e+00 : f32
    %52 = vector.broadcast %cst_23 : f32 to vector<16x1xf32>
    %53 = vector.extract_strided_slice %51 {offsets = [0, 1], sizes = [16, 143], strides = [1, 1]} : vector<16x144xf32> to vector<16x143xf32>
    %54 = tpu.concatenate %53, %52 in 1 : vector<16x143xf32>, vector<16x1xf32> -> vector<16x144xf32>
    %55 = arith.addf %50, %54 : vector<16x144xf32>
    %c0_24 = arith.constant 0 : index
    %c0_25 = arith.constant 0 : index
    %56 = vector.load %arg6[%c0_24, %c0_25] : memref<16x1xf32, #tpu.memory_space<vmem>>, vector<16x1xf32>
    %57 = vector.broadcast %56 : vector<16x1xf32> to vector<16x144xf32>
    %58 = arith.addf %55, %57 : vector<16x144xf32>
    %cst_26 = arith.constant 0.000000e+00 : f32
    %59 = vector.broadcast %cst_26 : f32 to vector<16x144xf32>
    %60 = arith.cmpf oge, %58, %59 : vector<16x144xf32>
    %cst_27 = arith.constant 2.000000e-01 : f32
    %61 = vector.broadcast %cst_27 : f32 to vector<16x144xf32>
    %62 = arith.mulf %61, %58 : vector<16x144xf32>
    %63 = arith.select %60, %58, %62 : vector<16x144xi1>, vector<16x144xf32>
    %cst_28 = arith.constant 0.000000e+00 : f32
    %64 = vector.shape_cast %13 : vector<1x144xi1> to vector<1x144xi1>
    %65 = vector.broadcast %64 : vector<1x144xi1> to vector<16x144xi1>
    %66 = vector.broadcast %cst_28 : f32 to vector<16x144xf32>
    %67 = arith.select %65, %63, %66 : vector<16x144xi1>, vector<16x144xf32>
    %68 = arith.truncf %67 : vector<16x144xf32> to vector<16x144xbf16>
    %c48 = arith.constant 48 : index
    %c0_29 = arith.constant 0 : index
    %69 = vector.load %arg14[%c48, %c0_29] : memref<96x144xbf16, #tpu.memory_space<vmem>>, vector<16x144xbf16>
    tpu.vector_store %arg14[%c48, %c0_29], %68 {strides = array<i32>} : memref<96x144xbf16, #tpu.memory_space<vmem>>, vector<16x144xbf16>,
    %c0_30 = arith.constant 0 : index
    %c0_31 = arith.constant 0 : index
    %70 = vector.load %arg14[%c0_30, %c0_31] : memref<96x144xbf16, #tpu.memory_space<vmem>>, vector<64x144xbf16>
    %c0_32 = arith.constant 0 : index
    %c0_33 = arith.constant 0 : index
    %71 = vector.load %arg7[%c0_32, %c0_33] : memref<48x64xbf16, #tpu.memory_space<vmem>>, vector<48x64xbf16>
    %cst_34 = arith.constant dense<0.000000e+00> : vector<48x144xf32>
    %72 = tpu.matmul %71, %70, %cst_34 {dimension_numbers = #tpu.dot_dimension_numbers<[1], [0], [0], [1], [0, 0, 1, 1], [], []>} : vector<48x64xbf16>, vector<64x144xbf16>, vector<48x144xf32> -> vector<48x144xf32>
    %73 = vector.extract_strided_slice %72 {offsets = [0, 0], sizes = [16, 144], strides = [1, 1]} : vector<48x144xf32> to vector<16x144xf32>
    %cst_35 = arith.constant 0.000000e+00 : f32
    %74 = vector.broadcast %cst_35 : f32 to vector<16x1xf32>
    %75 = vector.extract_strided_slice %73 {offsets = [0, 0], sizes = [16, 143], strides = [1, 1]} : vector<16x144xf32> to vector<16x143xf32>
    %76 = tpu.concatenate %74, %75 in 1 : vector<16x1xf32>, vector<16x143xf32> -> vector<16x144xf32>
    %77 = vector.extract_strided_slice %72 {offsets = [16, 0], sizes = [16, 144], strides = [1, 1]} : vector<48x144xf32> to vector<16x144xf32>
    %78 = arith.addf %76, %77 : vector<16x144xf32>
    %79 = vector.extract_strided_slice %72 {offsets = [32, 0], sizes = [16, 144], strides = [1, 1]} : vector<48x144xf32> to vector<16x144xf32>
    %cst_36 = arith.constant 0.000000e+00 : f32
    %80 = vector.broadcast %cst_36 : f32 to vector<16x1xf32>
    %81 = vector.extract_strided_slice %79 {offsets = [0, 1], sizes = [16, 143], strides = [1, 1]} : vector<16x144xf32> to vector<16x143xf32>
    %82 = tpu.concatenate %81, %80 in 1 : vector<16x143xf32>, vector<16x1xf32> -> vector<16x144xf32>
    %83 = arith.addf %78, %82 : vector<16x144xf32>
    %c0_37 = arith.constant 0 : index
    %c0_38 = arith.constant 0 : index
    %84 = vector.load %arg8[%c0_37, %c0_38] : memref<16x1xf32, #tpu.memory_space<vmem>>, vector<16x1xf32>
    %85 = vector.broadcast %84 : vector<16x1xf32> to vector<16x144xf32>
    %86 = arith.addf %83, %85 : vector<16x144xf32>
    %cst_39 = arith.constant 0.000000e+00 : f32
    %87 = vector.broadcast %cst_39 : f32 to vector<16x144xf32>
    %88 = arith.cmpf oge, %86, %87 : vector<16x144xf32>
    %cst_40 = arith.constant 2.000000e-01 : f32
    %89 = vector.broadcast %cst_40 : f32 to vector<16x144xf32>
    %90 = arith.mulf %89, %86 : vector<16x144xf32>
    %91 = arith.select %88, %86, %90 : vector<16x144xi1>, vector<16x144xf32>
    %cst_41 = arith.constant 0.000000e+00 : f32
    %92 = vector.shape_cast %13 : vector<1x144xi1> to vector<1x144xi1>
    %93 = vector.broadcast %92 : vector<1x144xi1> to vector<16x144xi1>
    %94 = vector.broadcast %cst_41 : f32 to vector<16x144xf32>
    %95 = arith.select %93, %91, %94 : vector<16x144xi1>, vector<16x144xf32>
    %96 = arith.truncf %95 : vector<16x144xf32> to vector<16x144xbf16>
    %c64 = arith.constant 64 : index
    %c0_42 = arith.constant 0 : index
    %97 = vector.load %arg14[%c64, %c0_42] : memref<96x144xbf16, #tpu.memory_space<vmem>>, vector<16x144xbf16>
    tpu.vector_store %arg14[%c64, %c0_42], %96 {strides = array<i32>} : memref<96x144xbf16, #tpu.memory_space<vmem>>, vector<16x144xbf16>,
    %c0_43 = arith.constant 0 : index
    %c0_44 = arith.constant 0 : index
    %98 = vector.load %arg14[%c0_43, %c0_44] : memref<96x144xbf16, #tpu.memory_space<vmem>>, vector<80x144xbf16>
    %c0_45 = arith.constant 0 : index
    %c0_46 = arith.constant 0 : index
    %99 = vector.load %arg9[%c0_45, %c0_46] : memref<48x80xbf16, #tpu.memory_space<vmem>>, vector<48x80xbf16>
    %cst_47 = arith.constant dense<0.000000e+00> : vector<48x144xf32>
    %100 = tpu.matmul %99, %98, %cst_47 {dimension_numbers = #tpu.dot_dimension_numbers<[1], [0], [0], [1], [0, 0, 1, 1], [], []>} : vector<48x80xbf16>, vector<80x144xbf16>, vector<48x144xf32> -> vector<48x144xf32>
    %101 = vector.extract_strided_slice %100 {offsets = [0, 0], sizes = [16, 144], strides = [1, 1]} : vector<48x144xf32> to vector<16x144xf32>
    %cst_48 = arith.constant 0.000000e+00 : f32
    %102 = vector.broadcast %cst_48 : f32 to vector<16x1xf32>
    %103 = vector.extract_strided_slice %101 {offsets = [0, 0], sizes = [16, 143], strides = [1, 1]} : vector<16x144xf32> to vector<16x143xf32>
    %104 = tpu.concatenate %102, %103 in 1 : vector<16x1xf32>, vector<16x143xf32> -> vector<16x144xf32>
    %105 = vector.extract_strided_slice %100 {offsets = [16, 0], sizes = [16, 144], strides = [1, 1]} : vector<48x144xf32> to vector<16x144xf32>
    %106 = arith.addf %104, %105 : vector<16x144xf32>
    %107 = vector.extract_strided_slice %100 {offsets = [32, 0], sizes = [16, 144], strides = [1, 1]} : vector<48x144xf32> to vector<16x144xf32>
    %cst_49 = arith.constant 0.000000e+00 : f32
    %108 = vector.broadcast %cst_49 : f32 to vector<16x1xf32>
    %109 = vector.extract_strided_slice %107 {offsets = [0, 1], sizes = [16, 143], strides = [1, 1]} : vector<16x144xf32> to vector<16x143xf32>
    %110 = tpu.concatenate %109, %108 in 1 : vector<16x143xf32>, vector<16x1xf32> -> vector<16x144xf32>
    %111 = arith.addf %106, %110 : vector<16x144xf32>
    %c0_50 = arith.constant 0 : index
    %c0_51 = arith.constant 0 : index
    %112 = vector.load %arg10[%c0_50, %c0_51] : memref<16x1xf32, #tpu.memory_space<vmem>>, vector<16x1xf32>
    %113 = vector.broadcast %112 : vector<16x1xf32> to vector<16x144xf32>
    %114 = arith.addf %111, %113 : vector<16x144xf32>
    %cst_52 = arith.constant 0.000000e+00 : f32
    %115 = vector.broadcast %cst_52 : f32 to vector<16x144xf32>
    %116 = arith.cmpf oge, %114, %115 : vector<16x144xf32>
    %cst_53 = arith.constant 2.000000e-01 : f32
    %117 = vector.broadcast %cst_53 : f32 to vector<16x144xf32>
    %118 = arith.mulf %117, %114 : vector<16x144xf32>
    %119 = arith.select %116, %114, %118 : vector<16x144xi1>, vector<16x144xf32>
    %cst_54 = arith.constant 0.000000e+00 : f32
    %120 = vector.shape_cast %13 : vector<1x144xi1> to vector<1x144xi1>
    %121 = vector.broadcast %120 : vector<1x144xi1> to vector<16x144xi1>
    %122 = vector.broadcast %cst_54 : f32 to vector<16x144xf32>
    %123 = arith.select %121, %119, %122 : vector<16x144xi1>, vector<16x144xf32>
    %124 = arith.truncf %123 : vector<16x144xf32> to vector<16x144xbf16>
    %c80 = arith.constant 80 : index
    %c0_55 = arith.constant 0 : index
    %125 = vector.load %arg14[%c80, %c0_55] : memref<96x144xbf16, #tpu.memory_space<vmem>>, vector<16x144xbf16>
    tpu.vector_store %arg14[%c80, %c0_55], %124 {strides = array<i32>} : memref<96x144xbf16, #tpu.memory_space<vmem>>, vector<16x144xbf16>,
    %c0_56 = arith.constant 0 : index
    %c0_57 = arith.constant 0 : index
    %126 = vector.load %arg14[%c0_56, %c0_57] : memref<96x144xbf16, #tpu.memory_space<vmem>>, vector<96x144xbf16>
    %c0_58 = arith.constant 0 : index
    %c0_59 = arith.constant 0 : index
    %127 = vector.load %arg11[%c0_58, %c0_59] : memref<96x96xbf16, #tpu.memory_space<vmem>>, vector<96x96xbf16>
    %cst_60 = arith.constant dense<0.000000e+00> : vector<96x144xf32>
    %128 = tpu.matmul %127, %126, %cst_60 {dimension_numbers = #tpu.dot_dimension_numbers<[1], [0], [0], [1], [0, 0, 1, 1], [], []>} : vector<96x96xbf16>, vector<96x144xbf16>, vector<96x144xf32> -> vector<96x144xf32>
    %129 = vector.extract_strided_slice %128 {offsets = [0, 0], sizes = [32, 144], strides = [1, 1]} : vector<96x144xf32> to vector<32x144xf32>
    %cst_61 = arith.constant 0.000000e+00 : f32
    %130 = vector.broadcast %cst_61 : f32 to vector<32x1xf32>
    %131 = vector.extract_strided_slice %129 {offsets = [0, 0], sizes = [32, 143], strides = [1, 1]} : vector<32x144xf32> to vector<32x143xf32>
    %132 = tpu.concatenate %130, %131 in 1 : vector<32x1xf32>, vector<32x143xf32> -> vector<32x144xf32>
    %133 = vector.extract_strided_slice %128 {offsets = [32, 0], sizes = [32, 144], strides = [1, 1]} : vector<96x144xf32> to vector<32x144xf32>
    %134 = arith.addf %132, %133 : vector<32x144xf32>
    %135 = vector.extract_strided_slice %128 {offsets = [64, 0], sizes = [32, 144], strides = [1, 1]} : vector<96x144xf32> to vector<32x144xf32>
    %cst_62 = arith.constant 0.000000e+00 : f32
    %136 = vector.broadcast %cst_62 : f32 to vector<32x1xf32>
    %137 = vector.extract_strided_slice %135 {offsets = [0, 1], sizes = [32, 143], strides = [1, 1]} : vector<32x144xf32> to vector<32x143xf32>
    %138 = tpu.concatenate %137, %136 in 1 : vector<32x143xf32>, vector<32x1xf32> -> vector<32x144xf32>
    %139 = arith.addf %134, %138 : vector<32x144xf32>
    %c0_63 = arith.constant 0 : index
    %c0_64 = arith.constant 0 : index
    %140 = vector.load %arg12[%c0_63, %c0_64] : memref<32x1xf32, #tpu.memory_space<vmem>>, vector<32x1xf32>
    %141 = vector.broadcast %140 : vector<32x1xf32> to vector<32x144xf32>
    %142 = arith.addf %139, %141 : vector<32x144xf32>
    %143 = vector.extract_strided_slice %142 {offsets = [0, 8], sizes = [32, 128], strides = [1, 1]} : vector<32x144xf32> to vector<32x128xf32>
    %144 = vector.extract_strided_slice %1 {offsets = [0, 8], sizes = [32, 128], strides = [1, 1]} : vector<32x144xf32> to vector<32x128xf32>
    %145 = arith.addf %143, %144 : vector<32x128xf32>
    %c0_65 = arith.constant 0 : index
    %c0_66 = arith.constant 0 : index
    %c0_67 = arith.constant 0 : index
    %146 = vector.load %arg13[%c0_65, %c0_66, %c0_67] : memref<1x32x128xf32, #tpu.memory_space<vmem>>, vector<1x32x128xf32>
    %147 = vector.shape_cast %146 : vector<1x32x128xf32> to vector<32x128xf32>
    %148 = vector.shape_cast %145 : vector<32x128xf32> to vector<1x32x128xf32>
    tpu.vector_store %arg13[%c0_65, %c0_66, %c0_67], %148 {strides = array<i32>} : memref<1x32x128xf32, #tpu.memory_space<vmem>>, vector<1x32x128xf32>,
    return
  }
  func.func @transform_0(%arg0: i32, %arg1: i32) -> (i32, i32, i32, i32) {
    %c0_i32 = arith.constant 0 : i32
    %c0_i32_0 = arith.constant 0 : i32
    %c0_i32_1 = arith.constant 0 : i32
    return %arg0, %arg1, %c0_i32, %c0_i32_0 : i32, i32, i32, i32
  }
  func.func @transform_1(%arg0: i32, %arg1: i32) -> (i32, i32) {
    %c0_i32 = arith.constant 0 : i32
    %c0_i32_0 = arith.constant 0 : i32
    %c0_i32_1 = arith.constant 0 : i32
    return %c0_i32, %c0_i32_0 : i32, i32
  }
  func.func @transform_2(%arg0: i32, %arg1: i32) -> (i32, i32) {
    %c0_i32 = arith.constant 0 : i32
    %c0_i32_0 = arith.constant 0 : i32
    %c0_i32_1 = arith.constant 0 : i32
    return %c0_i32, %c0_i32_0 : i32, i32
  }
  func.func @transform_3(%arg0: i32, %arg1: i32) -> (i32, i32) {
    %c0_i32 = arith.constant 0 : i32
    %c0_i32_0 = arith.constant 0 : i32
    %c0_i32_1 = arith.constant 0 : i32
    return %c0_i32, %c0_i32_0 : i32, i32
  }
  func.func @transform_4(%arg0: i32, %arg1: i32) -> (i32, i32) {
    %c0_i32 = arith.constant 0 : i32
    %c0_i32_0 = arith.constant 0 : i32
    %c0_i32_1 = arith.constant 0 : i32
    return %c0_i32, %c0_i32_0 : i32, i32
  }
  func.func @transform_5(%arg0: i32, %arg1: i32) -> (i32, i32) {
    %c0_i32 = arith.constant 0 : i32
    %c0_i32_0 = arith.constant 0 : i32
    %c0_i32_1 = arith.constant 0 : i32
    return %c0_i32, %c0_i32_0 : i32, i32
  }
  func.func @transform_6(%arg0: i32, %arg1: i32) -> (i32, i32) {
    %c0_i32 = arith.constant 0 : i32
    %c0_i32_0 = arith.constant 0 : i32
    %c0_i32_1 = arith.constant 0 : i32
    return %c0_i32, %c0_i32_0 : i32, i32
  }
  func.func @transform_7(%arg0: i32, %arg1: i32) -> (i32, i32) {
    %c0_i32 = arith.constant 0 : i32
    %c0_i32_0 = arith.constant 0 : i32
    %c0_i32_1 = arith.constant 0 : i32
    return %c0_i32, %c0_i32_0 : i32, i32
  }
  func.func @transform_8(%arg0: i32, %arg1: i32) -> (i32, i32) {
    %c0_i32 = arith.constant 0 : i32
    %c0_i32_0 = arith.constant 0 : i32
    %c0_i32_1 = arith.constant 0 : i32
    return %c0_i32, %c0_i32_0 : i32, i32
  }
  func.func @transform_9(%arg0: i32, %arg1: i32) -> (i32, i32) {
    %c0_i32 = arith.constant 0 : i32
    %c0_i32_0 = arith.constant 0 : i32
    %c0_i32_1 = arith.constant 0 : i32
    return %c0_i32, %c0_i32_0 : i32, i32
  }
  func.func @transform_10(%arg0: i32, %arg1: i32) -> (i32, i32) {
    %c0_i32 = arith.constant 0 : i32
    %c0_i32_0 = arith.constant 0 : i32
    %c0_i32_1 = arith.constant 0 : i32
    return %c0_i32, %c0_i32_0 : i32, i32
  }
  func.func @transform_11(%arg0: i32, %arg1: i32) -> (i32, i32, i32) {
    %c0_i32 = arith.constant 0 : i32
    %c0_i32_0 = arith.constant 0 : i32
    return %arg0, %c0_i32, %arg1 : i32, i32, i32
  }
}

</mosaic_0001>

<bundles_post_ra>
// kernel: tpu_custom_call.1
= control target key start
LH: loop header
LB: loop body
LE: loop exit
PB: predicated region body
PF: predicated region fallthrough
CT: control target
= control target key end

     0   :  { %s2587_s0 = inlined_call_operand.hbm [shape: f32[2,2,32,144], index: 0, kind: input, shape index: {}]   ;;  %s2588_s1 = inlined_call_operand.vmem [shape: bf16[48,32], index: 1, kind: input, shape index: {}]   ;;  %s2589_s2 = inlined_call_operand.vmem [shape: f32[16,1], index: 2, kind: input, shape index: {}]   ;;  %s2590_s3 = inlined_call_operand.vmem [shape: bf16[48,48], index: 3, kind: input, shape index: {}]   ;;  %s2591_s4 = inlined_call_operand.vmem [shape: f32[16,1], index: 4, kind: input, shape index: {}]   ;;  %s2592_s5 = inlined_call_operand.vmem [shape: bf16[48,64], index: 5, kind: input, shape index: {}]   ;;  %s2593_s6 = inlined_call_operand.vmem [shape: f32[16,1], index: 6, kind: input, shape index: {}]   ;;  %s2594_s7 = inlined_call_operand.vmem [shape: bf16[48,80], index: 7, kind: input, shape index: {}]   ;;  %s2595_s8 = inlined_call_operand.vmem [shape: f32[16,1], index: 8, kind: input, shape index: {}]   ;;  %s2596_s9 = inlined_call_operand.vmem [shape: bf16[96,96], index: 9, kind: input, shape index: {}]   ;;  %s2597_s10 = inlined_call_operand.vmem [shape: f32[32,1], index: 10, kind: input, shape index: {}]   ;;  %s2598_s11 = inlined_call_operand.hbm [shape: f32[2,32,256], index: 11, kind: output, shape index: {}]  }
   0x1   :  { %2608 = sst [smem:[#allocation13_spill]] %s2587_s0 }
   0x2   :  { %2609 = sst [smem:[#allocation14_spill]] %s2594_s7 }
   0x3   :  { %2610 = sst [smem:[#allocation15_spill]] %s2595_s8 }
   0x4   :  { %2611 = sst [smem:[#allocation16_spill]] %s2596_s9 }
   0x5   :  { %2612 = sst [smem:[#allocation17_spill]] %s2597_s10 }
   0x6   :  { %2613 = sst [smem:[#allocation18_spill]] %s2598_s11 }
   0x7   :  { %16 = vsyncpa [#allocation4], 0 }
   0x8   :  { %18 = vsyncpa [#allocation4 + $0x1], 0 }
   0x9   :  { %19 = vsyncpa [#allocation5], 0 }
   0xa   :  { %21 = vsyncpa [#allocation5 + $0x1], 0  ;;  %s2045_s17 = smov 0   ;;  %s2047_s18 = smov 0  }
   0xb   :  { %s2049_s19 = smov 0   ;;  %s2051_s20 = smov 0  }
   0xc   :  { %s2053_s21 = smov 0   ;;  %s2055_s22 = smov 0  }
   0xd   :  { %s2057_s23 = smov 0   ;;  %s2059_s24 = smov 0  }
   0xe LB: > { %2614 = sst [smem:[#allocation9_spill]] %s1944_s17  ;;  %s1645_s25 = sadd.s32 4294967295, %s1972_s24   ;;  %s1972_s24 = sphi %s2059_s24, %s27_s24   ;;  %s1968_s23 = sphi %s2057_s23, %s2647_s23   ;;  %s1964_s22 = sphi %s2055_s22, %s2646_s22   ;;  %s1960_s21 = sphi %s2053_s21, %s2645_s21   ;;  %s1956_s20 = sphi %s2051_s20, %s2644_s20   ;;  %s1952_s19 = sphi %s2049_s19, %s2643_s19   ;;  %s1948_s18 = sphi %s2047_s18, %s2642_s18   ;;  %s1944_s17 = sphi %s2045_s17, %s2641_s17  }
   0xf   : > { %2615 = sst [smem:[#allocation10_spill]] %s1960_s21  ;;  %s1646_s26 = sadd.s32 4294967294, %s1972_s24  }
  0x10   : > { %s36_s27 = sadd.s32 1, %s1964_s22  ;;  %s39_s28 = sadd.s32 1, %s1968_s23 }
  0x11   : > { %p37_p0 = scmp.ge.s32.totalorder %s36_s27, 2  ;;  %s48_s29 = sadd.s32 1, %s1952_s19 }
  0x12   : > { %p55_p1 = scmp.ne.s32.totalorder %s1952_s19, %s1948_s18  ;;  %p56_p2 = scmp.eq.s32.totalorder %s1972_s24, 0 }
  0x13   : > { %s2649_s27 = smov (%p37_p0, %s36_s27), 0  ;;  %s2651_s28 = smov (!%p37_p0, %s39_s28), %s1968_s23 }
  0x14   : > { %2616 = sst [smem:[#allocation11_spill]] %s2649_s27  ;;  %s44_s30 = ssub.s32 %s1964_s22, %s2649_s27 }
  0x15   : > { %p2098_p3 = por %p56_p2, %p55_p1  ;;  %p41_p4 = scmp.ge.s32.totalorder %s2651_s28, 2 }
  0x16   : > { %p61_p5 = scmp.ne.s32.totalorder %s1948_s18, %s1944_s17  ;;  %p62_p6 = scmp.eq.s32.totalorder %s1645_s25, 0 }
  0x17   : > { %p297_p7 = scmp.eq.s32.totalorder %s1645_s25, 3  ;;  %s2653_s28 = smov (%p41_p4, %s2651_s28), 0 }
  0x18   : > { %2618 = sst [smem:[#allocation12_spill]] %s2653_s28  ;;  %p2106_p8 = por %p62_p6, %p61_p5 }
  0x19   : > { %p2110_p9 = por %p297_p7, %p55_p1  ;;  %s43_s15 = ssub.s32 %s1968_s23, %s2653_s28 }
  0x1a   : > { %p303_p10 = scmp.eq.s32.totalorder %s1646_s26, 3  ;;  %s45_s16 = sor.u32 %s44_s30, %s43_s15 }
  0x1b   : > { %s2620_s14 = scalar_select %p2110_p9, 1, 0 }
  0x1c   : > { %p46_p11 = scmp.eq.s32.totalorder %s45_s16, 0  ;;  %p2116_p12 = por %p303_p10, %p61_p5 }
  0x1d   : > { %p1711_p13 = scmp.lt.s32.totalorder %s1972_s24, 4  ;;  %s353_s25 = sand.u32 1, %s1952_s19  }
  0x1e   : > { %s2621_s27 = scalar_select %p2116_p12, 1, 0 }
  0x1f   : > { %s2123_s17 = scalar_select %p46_p11, %s1952_s19, %s48_s29  }
  0x20   : > { %s1649_s11 = sshll.u32 %s353_s25, 6  ;;  %s1650_s21 = sshll.u32 %s1964_s22, 3 }
  0x21   : > { %s1651_s9 = sshll.u32 %s1968_s23, 4  ;;  %s357_s10 = scalar_lea.vmem [#allocation3], %s1649_s11 }
  0x22   : > { %s366_s7 = sshll.u32 %s357_s10, 4  ;;  %s363_s8 = sadd.s32 %s1651_s9, %s1650_s21  ;;  %s2127_s7 = int_to_ptr.vmem [resolvable:$true] %s366_s7 }
  0x23   : > { %s1652_s28 = sshll.u32 %s363_s8, 7  ;;  %p2131_p0 = pnand %p1711_p13, %p2098_p3 }
  0x24   : > { %s2623_s0 = sld [smem:[#allocation13_spill]]  ;;  %s2140_s9 = scalar_lea.sflag [#allocation4], %s353_s25 }
  0x25   : > { %p1846_p2 = pneg %p2131_p0 }
  0x2a   : > { %s2138_s29 = scalar_lea.hbm %s2623_s0, %s1652_s28  ;;  %s1849_s21 = scalar_lea.hbm %s2623_s0, 4096 }
  0x2b   : > { %s1844_s10 = scalar_lea.hbm %s2138_s29, 1024  ;;  %p1850_p5 = scmp.lt.u32.totalorder %s2138_s29, %s2623_s0 }
  0x2c   : > { %p1845_p1 = scmp.ne.s32.totalorder %s2138_s29, %s1844_s10  ;;  %p1851_p6 = scmp.lt.u32.totalorder %s1849_s21, %s1844_s10 }
  0x2d   : > { %p1853_p10 = scmp.lt.u32.totalorder %s1844_s10, %s2138_s29 }
  0x2e   : > { %p1847_p3 = pnand %p1846_p2, %p1845_p1  ;;  %p1852_p7 = por %p1851_p6, %p1850_p5 }
  0x30   : > { %p1848_p4 = pneg %p1847_p3  ;;  %p1854_p11 = por %p1853_p10, %p1852_p7 }
  0x32   : > { %p1855_p13 = pnand %p1854_p11, %p1848_p4 }
  0x34   : > { %1858 = shalt.err (!%p1855_p13)
}
  0x35   : > { %s1859_s16 = scalar_lea.vmem %s2127_s7, 1024  ;;  %s1974_s25 = smov [#allocation3]  }
  0x36   : > { %p1860_p1 = scmp.ne.s32.totalorder %s2127_s7, %s1859_s16  ;;  %s1864_s30 = sshll.u32 %s1974_s25, 4  ;;  %s1865_s30 = int_to_ptr.vmem [resolvable:$false] %s1864_s30 }
  0x37   : > { %s1866_s15 = scalar_lea.vmem %s1865_s30, 2048  ;;  %p1867_p9 = scmp.lt.s32.totalorder %s2127_s7, %s1865_s30 }
  0x38   : > { %p1862_p3 = pnand %p1860_p1, %p1846_p2  ;;  %p1868_p5 = scmp.lt.s32.totalorder %s1866_s15, %s1859_s16 }
  0x3a   : > { %p1863_p12 = pneg %p1862_p3  ;;  %p1869_p6 = por %p1868_p5, %p1867_p9 }
  0x3c   : > { %p1870_p7 = pnand %p1869_p6, %p1863_p12 }
  0x3e   : > { %1873 = shalt.err (!%p1870_p7)
}
  0x3f   : > { %s1975_s10 = smov 256   ;;  %s1976_s8 = smov 16  }
  0x40   : > { %1706 = dma.hbm_to_vmem [thread:$0]  (!%p2131_p0), %s2138_s29, 1024, %s2127_s7, %s2140_s9, %s1975_s10, %s1975_s10, %s1976_s8  }
  0x41   : > { %p1653_p2 = scmp.ge.s32.totalorder %s1972_s24, 1  ;;  %p374_p4 = scmp.lt.s32.totalorder %s1972_s24, 5 }
  0x43   : > { %p375_p10 = pnand %p1653_p2, %p374_p4 }
  0x44   : > { %s2171_s11 = sand.u32 (!%p375_p10), 1, %s1948_s18  }
  0x45   : > { %378 = sbr.rel (%p375_p10) target bundleno = 2083 (0x823), region = 64  ;;  %s1654_s21 = sshll.u32 (!%p375_p10), %s2171_s11, 6 }
  0x46   : > { %s381_s28 = scalar_lea.sflag (!%p375_p10), [#allocation4], %s2171_s11  ;;  %s2175_s12 = scalar_lea.vmem (!%p375_p10), [#allocation3], %s1654_s21 }
  0x4c   : > { %1935 = dma.done.wait (%p2106_p8), %s381_s28, 1024  }
  0x4d   : > { %1937 = vsyncadd (%p2106_p8), %s381_s28, 4294966272  ;;  %v1977_v0 = vmov 0   ;;  %v425_v1 = vld [vmem:[%s2175_s12 + $0x8] sm:$0xff]  ;;  %v427_v2 = vld [vmem:[%s2175_s12 + $0x18] sm:$0xff]  ;;  %vm437_vm0 = vcmask 130048   ;;  %vm480_vm1 = vcmask 261120   ;;  %v441_v36 = vlaneseq }
  0x4e   : > { %522 = vmatprep.mubr.bf16.mxu0 %v1977_v0  ;;  %1786 = vset.pattern.permute.xlu0 %v1977_v0  ;;  %v424_v3 = vld [vmem:[%s2175_s12] sm:$0xff]  ;;  %v433_v4 = vpack.c.bf16 %v427_v2, %v425_v1  ;;  %v426_v5 = vld [vmem:[%s2175_s12 + $0x10] sm:$0xff]  ;;  %v429_v6 = vld [vmem:[%s2175_s12 + $0x28] sm:$0xff]  ;;  %s1978_s8 = smov 1   ;;  %s1979_s21 = smov 127   ;;  %vm565_vm2 = vcmask 7168  }
  0x4f   : > { %713 = vmatprep.mubr.bf16.mxu1 %v1977_v0  ;;  %1787 = vset.pattern.permute.xlu1 %v1977_v0  ;;  %v431_v7 = vld [vmem:[%s2175_s12 + $0x38] sm:$0xff]  ;;  %v2191_v8 = vpack.c.bf16 %v426_v5, %v424_v3  ;;  %v428_v10 = vld [vmem:[%s2175_s12 + $0x20] sm:$0xff]  ;;  %v430_v11 = vld [vmem:[%s2175_s12 + $0x30] sm:$0xff]  ;;  %s1656_s29 = sshll.u32 %s1956_s20, 7  ;;  %v442_v39 = vand.u32 127, %v441_v36  ;;  %vm597_vm3 = vcmask 121856  }
  0x50   : > { %v435_v9 = vpack.c.bf16 %v431_v7, %v429_v6  ;;  %438 = vst.msk [vmem:[#allocation2 + $0x8] sm:$0xff] %vm437_vm0, %v433_v4  ;;  %v2196_v12 = vpack.c.bf16 %v430_v11, %v428_v10  ;;  %v604_v13 = vld [vmem:[%s2589_s2] sm:$0xff]  ;;  %v605_v14 = vld [vmem:[%s2589_s2 + $0x8] sm:$0xff]  ;;  %v1790_v19 = vld [vmem:[%s2588_s1 + $0x10] sm:$0xff]   ;;  %s1657_s9 = sadd.s32 4294967288, %s1656_s29  ;;  %vm590_vm4 = vcmask 1039360  }
  0x51   : > { %608 = vperm.xlu0 %1786, %v604_v13   ;;  %v1788_v17 = vld [vmem:[%s2588_s1] sm:$0xff]   ;;  %v1789_v18 = vld [vmem:[%s2588_s1 + $0x8] sm:$0xff]   ;;  %v443_v43 = vadd.s32 128, %v442_v39  ;;  %v446_v44 = vstv %s1657_s9  ;;  %s2628_s13 = sld [smem:[#allocation15_spill]]  ;;  %s2629_s25 = sld [smem:[#allocation14_spill]] }
  0x52   : > { %440 = vst.msk [vmem:[#allocation2 + $0x18] sm:$0xff] %vm437_vm0, %v435_v9  ;;  %v792_v32 = vld [vmem:[%s2591_s4] sm:$0xff]  ;;  %v793_v33 = vld [vmem:[%s2591_s4 + $0x8] sm:$0xff]  ;;  %v447_v60 = vadd.s32 %v446_v44, %v442_v39  ;;  %s2630_s29 = sld [smem:[#allocation17_spill]]  ;;  %s2631_s9 = sld [smem:[#allocation16_spill]] }
  0x53   : > { %v448_v49 = vadd.s32 %v446_v44, %v443_v43  ;;  %s1655_s10 = sshll.u32 %s2171_s11, 5  ;;  %p2634_p9 = scmp.ne.s32.totalorder %s2620_s14, 0 }
  0x54   : > { %vm449_vm10 = vcmp.ge.s32.totalorder %v447_v60, 0  ;;  %vm451_vm11 = vcmp.lt.s32.totalorder %v447_v60, 200  ;;  %s422_s28 = scalar_lea.vmem [#allocation6], %s1655_s10 }
  0x55   : > { %613 = vperm.xlu0 %1786, %v605_v14   ;;  %vm450_vm5 = vcmp.ge.s32.totalorder %v448_v49, 0  ;;  %vm452_vm6 = vcmp.lt.s32.totalorder %v448_v49, 200  ;;  %vm453_vm13 = vmand %vm449_vm10, %vm451_vm11  ;;  %vm857_vm10 = vcmask 523264   ;;  %s1556_s26 = sshll.u32 %s422_s28, 4  ;;  %s2527_s26 = int_to_ptr.vmem [resolvable:$true] %s1556_s26 }
  0x56   : > { %vm2259_vm8 = vmand %vm450_vm5, %vm452_vm6  ;;  %s1874_s10 = scalar_lea.vmem %s2527_s26, 512 }
  0x57   : > { %v2205_v15 = vld [vmem:[#allocation2 + $0x8] sm:$0xff]  ;;  %vm2275_vm15 = vmpackc.low %vm453_vm13, %vm453_vm13  ;;  %p1875_p8 = scmp.ne.s32.totalorder %s2527_s26, %s1874_s10 }
  0x58   : > { %490 = vmatprep.subr.bf16.mxu0 %v2205_v15  ;;  %681 = vmatprep.subr.bf16.mxu1 %v2205_v15  ;;  %v1801_v5 = vld [vmem:[%s2631_s9 + $0x8] sm:$0xff]  }
  0x59   : > { %v2208_v16 = vld [vmem:[#allocation2 + $0x18] sm:$0xff]  ;;  %491 = vmatpush1.bf16.msra.mxu0 %v2191_v8  ;;  %682 = vmatpush1.bf16.msra.mxu1 %v2191_v8  ;;  %p1876_p12 = pnand %p1875_p8, %p2634_p9 }
  0x5a   : > { %492 = vmatprep.subr.bf16.mxu0 %v2208_v16  ;;  %683 = vmatprep.subr.bf16.mxu1 %v2208_v16 }
  0x5b   : > { %p1877_p0 = pneg %p1876_p12 }
  0x5d   : > { %493 = vmatpush1.bf16.msra.mxu0 %v2196_v12  ;;  %684 = vmatpush1.bf16.msra.mxu1 %v2196_v12 }
  0x5e   : > { %1275 = vmatprep.subr.bf16.mxu0 %v2205_v15 }
  0x60   : > { %1661 = vmatmul.mubr.msk.bf16.vlgmr.msra.gmra.mrb[0].mxu0 %vm480_vm1, %v1788_v17 }
  0x61   : > { %532 = vmatprep.mubr.bf16.mxu0 %v1977_v0  ;;  %1276 = vmatpush1.bf16.msra.mxu0 %v2191_v8 }
  0x62   : > { %1277 = vmatprep.subr.bf16.mxu0 %v2208_v16 }
  0x65   : > { %1278 = vmatpush1.bf16.msra.mxu0 %v2196_v12 }
  0x68   : > { %1662 = vmatmul.mubr.msk.bf16.gmra.mrb[4].mxu0 %vm480_vm1, %v1789_v18 }
  0x69   : > { %542 = vmatprep.mubr.bf16.mxu0 %v1977_v0 }
  0x70   : > { %1663 = vmatmul.mubr.msk.bf16.gmra.mrb[8].mxu0 %vm480_vm1, %v1790_v19  ;;  %vm671_vm1 = vcmask 392192  }
  0x71   : > { %1307 = vmatprep.mubr.bf16.mxu0 %v1977_v0 }
  0xd0   : > { %v609_v34 = vpop.permute.xlu0 %608 }
  0xd4   : > { %v614_v37 = vpop.permute.xlu0 %613 }
 0x133   : > { %v524_v20 = vpop.f32.mrb[0].mxu0 }
 0x134   : > { %557 = vrot.lane.b32.xlu1 %v524_v20, %s1978_s8  ;;  %v526_v21 = vpop.f32.mrb[1].mxu0 }
 0x135   : > { %v528_v22 = vpop.f32.mrb[2].mxu0 }
 0x136   : > { %561 = vrot.lane.b32.xlu0 %v528_v22, %s1978_s8  ;;  %v530_v23 = vpop.f32.mrb[3].mxu0 }
 0x138   : > { %559 = vrot.lane.b32.xlu1 %v526_v21, %s1978_s8 }
 0x13b   : > { %v534_v24 = vpop.f32.mrb[4].mxu0 }
 0x13c   : > { %563 = vrot.lane.b32.xlu1 %v530_v23, %s1978_s8  ;;  %v536_v25 = vpop.f32.mrb[5].mxu0 }
 0x13d   : > { %v538_v26 = vpop.f32.mrb[6].mxu0 }
 0x13e   : > { %v540_v27 = vpop.f32.mrb[7].mxu0 }
 0x143   : > { %v544_v28 = vpop.f32.mrb[8].mxu0 }
 0x144   : > { %v546_v29 = vpop.f32.mrb[9].mxu0 }
 0x145   : > { %584 = vrot.lane.b32.xlu0 %v546_v29, %s1979_s21  ;;  %v548_v30 = vpop.f32.mrb[10].mxu0 }
 0x146   : > { %v550_v31 = vpop.f32.mrb[11].mxu0 }
 0x147   : > { %588 = vrot.lane.b32.xlu1 %v550_v31, %s1979_s21 }
 0x149   : > { %582 = vrot.lane.b32.xlu0 %v544_v28, %s1979_s21  ;;  %v1793_v28 = vld [vmem:[%s2590_s3 + $0x10] sm:$0xff]  }
 0x14b   : > { %586 = vrot.lane.b32.xlu1 %v548_v30, %s1979_s21 }
 0x14d   : > { %796 = vperm.xlu0 %1786, %v792_v32  }
 0x14f   : > { %801 = vperm.xlu1 %1787, %v793_v33  }
 0x1a6   : > { %v558_v35 = vpop.permute.xlu1 %557 }
 0x1a7   : > { %v572_v48 = vsel %vm565_vm2, 0.0, %v558_v35 }
 0x1a8   : > { %v562_v40 = vpop.permute.xlu0 %561  ;;  %v574_v55 = vadd.f32 %v572_v48, %v534_v24  ;;  %v1791_v24 = vld [vmem:[%s2590_s3] sm:$0xff]  }
 0x1a9   : > { %v573_v56 = vsel %vm565_vm2, 0.0, %v562_v40 }
 0x1aa   : > { %v560_v38 = vpop.permute.xlu1 %559  ;;  %v576_v3 = vadd.f32 %v573_v56, %v538_v26 }
 0x1ab   : > { %v566_v42 = vsel %vm565_vm2, %v558_v35, %v560_v38 }
 0x1ac   : > { %v575_v46 = vadd.f32 %v566_v42, %v536_v25  ;;  %v979_v42 = vld [vmem:[%s2593_s6 + $0x8] sm:$0xff]  ;;  %v1803_v25 = vld [vmem:[%s2631_s9 + $0x18] sm:$0xff]  }
 0x1ae   : > { %v564_v41 = vpop.permute.xlu1 %563 }
 0x1af   : > { %v567_v45 = vsel %vm565_vm2, %v562_v40, %v564_v41  ;;  %v978_v41 = vld [vmem:[%s2593_s6] sm:$0xff] }
 0x1b0   : > { %v577_v51 = vadd.f32 %v567_v45, %v540_v27  ;;  %v1792_v27 = vld [vmem:[%s2590_s3 + $0x8] sm:$0xff]  }
 0x1b7   : > { %v585_v47 = vpop.permute.xlu0 %584 }
 0x1b8   : > { %v598_v50 = vsel %vm597_vm3, %v585_v47, 0.0 }
 0x1b9   : > { %v601_v52 = vadd.f32 %v598_v50, %v575_v46  ;;  %v589_v53 = vpop.permute.xlu1 %588 }
 0x1ba   : > { %v599_v54 = vsel %vm597_vm3, %v589_v53, 0.0 }
 0x1bb   : > { %v617_v57 = vadd.f32 %v609_v34, %v601_v52  ;;  %v603_v58 = vadd.f32 %v599_v54, %v577_v51  ;;  %v583_v59 = vpop.permute.xlu0 %582 }
 0x1bc   : > { %v591_v61 = vsel %vm590_vm4, %v583_v59, %v585_v47 }
 0x1bd   : > { %vm621_vm7 = vcmp.ge.f32.partialorder %v617_v57, 0.0  ;;  %v625_v62 = vmul.f32 0.2, %v617_v57  ;;  %v619_v63 = vadd.f32 %v614_v37, %v603_v58  ;;  %v600_v1 = vadd.f32 %v591_v61, %v574_v55  ;;  %v587_v2 = vpop.permute.xlu1 %586 }
 0x1be   : > { %v592_v4 = vsel %vm590_vm4, %v587_v2, %v589_v53 }
 0x1bf   : > { %v629_v6 = vsel %vm621_vm7, %v617_v57, %v625_v62  ;;  %vm623_vm9 = vcmp.ge.f32.partialorder %v619_v63, 0.0  ;;  %v627_v7 = vmul.f32 0.2, %v619_v63  ;;  %v616_v9 = vadd.f32 %v609_v34, %v600_v1 }
 0x1c0   : > { %v602_v10 = vadd.f32 %v592_v4, %v576_v3  ;;  %v637_v14 = vsel %vm2259_vm8, %v629_v6, 0.0 }
 0x1c1   : > { %v631_v11 = vsel %vm623_vm9, %v619_v63, %v627_v7  ;;  %vm620_vm12 = vcmp.ge.f32.partialorder %v616_v9, 0.0  ;;  %v624_v13 = vmul.f32 0.2, %v616_v9 }
 0x1c2   : > { %v639_v17 = vsel %vm2259_vm8, %v631_v11, 0.0  ;;  %v618_v18 = vadd.f32 %v614_v37, %v602_v10 }
 0x1c3   : > { %v641_v19 = vpack.c.bf16 %v639_v17, %v637_v14  ;;  %v628_v20 = vsel %vm620_vm12, %v616_v9, %v624_v13 }
 0x1c4   : > { %vm622_vm14 = vcmp.ge.f32.partialorder %v618_v18, 0.0  ;;  %v626_v21 = vmul.f32 0.2, %v618_v18 }
 0x1c5   : > { %643 = vst.msk [vmem:[#allocation2 + $0x28] sm:$0xff] %vm437_vm0, %v641_v19 }
 0x1c6   : > { %v630_v22 = vsel %vm622_vm14, %v618_v18, %v626_v21 }
 0x1c7   : > { %v2279_v26 = vpack.c.bf16 %v630_v22, %v628_v20 }
 0x1cc   : > { %v2268_v23 = vld [vmem:[#allocation2 + $0x28] sm:$0xff]  ;;  %v797_v44 = vpop.permute.xlu0 %796 }
 0x1cd   : > { %685 = vmatprep.subr.bf16.mxu1 %v2268_v23  ;;  %1279 = vmatprep.subr.bf16.mxu0 %v2268_v23 }
 0x1ce   : > { %1816 = vmatpush1.bf16.msk.msra.mxu1 %vm2275_vm15, %v2279_v26  ;;  %1819 = vmatpush1.bf16.msk.msra.mxu0 %vm2275_vm15, %v2279_v26  ;;  %v802_v43 = vpop.permute.xlu1 %801 }
 0x1cf   : > { %867 = vmatprep.subr.bf16.mxu1 %v2205_v15 }
 0x1d1   : > { %1667 = vmatmul.mubr.msk.bf16.vlgmr.msra.gmra.mrb[0].mxu1 %vm671_vm1, %v1791_v24 }
 0x1d2   : > { %868 = vmatpush1.bf16.msra.mxu1 %v2191_v8  ;;  %723 = vmatprep.mubr.bf16.mxu1 %v1977_v0 }
 0x1d3   : > { %869 = vmatprep.subr.bf16.mxu1 %v2208_v16 }
 0x1d6   : > { %870 = vmatpush1.bf16.msra.mxu1 %v2196_v12 }
 0x1d7   : > { %871 = vmatprep.subr.bf16.mxu1 %v2268_v23 }
 0x1d9   : > { %1668 = vmatmul.mubr.msk.bf16.gmra.mrb[4].mxu1 %vm671_vm1, %v1792_v27 }
 0x1da   : > { %1822 = vmatpush1.bf16.msk.msra.mxu1 %vm2275_vm15, %v2279_v26  ;;  %733 = vmatprep.mubr.bf16.mxu1 %v1977_v0 }
 0x1e1   : > { %1669 = vmatmul.mubr.msk.bf16.gmra.mrb[8].mxu1 %vm671_vm1, %v1793_v28  ;;  %vm1045_vm1 = vcmask 654336  }
 0x1e2   : > { %899 = vmatprep.mubr.bf16.mxu1 %v1977_v0 }
 0x2a4   : > { %v715_v29 = vpop.f32.mrb[0].mxu1 }
 0x2a5   : > { %748 = vrot.lane.b32.xlu0 %v715_v29, %s1978_s8  ;;  %v717_v30 = vpop.f32.mrb[1].mxu1 }
 0x2a6   : > { %750 = vrot.lane.b32.xlu1 %v717_v30, %s1978_s8  ;;  %v719_v31 = vpop.f32.mrb[2].mxu1  ;;  %v1794_v30 = vld [vmem:[%s2592_s5] sm:$0xff]  }
 0x2a7   : > { %v721_v32 = vpop.f32.mrb[3].mxu1 }
 0x2a9   : > { %752 = vrot.lane.b32.xlu0 %v719_v31, %s1978_s8 }
 0x2aa   : > { %754 = vrot.lane.b32.xlu1 %v721_v32, %s1978_s8  ;;  %v1795_v32 = vld [vmem:[%s2592_s5 + $0x8] sm:$0xff]  }
 0x2ac   : > { %v725_v33 = vpop.f32.mrb[4].mxu1 }
 0x2ad   : > { %v727_v34 = vpop.f32.mrb[5].mxu1 }
 0x2ae   : > { %v729_v35 = vpop.f32.mrb[6].mxu1 }
 0x2af   : > { %v731_v36 = vpop.f32.mrb[7].mxu1 }
 0x2b4   : > { %v735_v37 = vpop.f32.mrb[8].mxu1 }
 0x2b5   : > { %v737_v38 = vpop.f32.mrb[9].mxu1 }
 0x2b6   : > { %774 = vrot.lane.b32.xlu0 %v737_v38, %s1979_s21  ;;  %v739_v39 = vpop.f32.mrb[10].mxu1 }
 0x2b7   : > { %v741_v40 = vpop.f32.mrb[11].mxu1 }
 0x2b8   : > { %778 = vrot.lane.b32.xlu1 %v741_v40, %s1979_s21  ;;  %v1166_v40 = vld [vmem:[%s2628_s13] sm:$0xff] }
 0x2ba   : > { %772 = vrot.lane.b32.xlu0 %v735_v37, %s1979_s21 }
 0x2bc   : > { %776 = vrot.lane.b32.xlu1 %v739_v39, %s1979_s21 }
 0x2be   : > { %982 = vperm.xlu0 %1786, %v978_v41   ;;  %v1167_v41 = vld [vmem:[%s2628_s13 + $0x8] sm:$0xff] }
 0x2c0   : > { %987 = vperm.xlu1 %1787, %v979_v42  }
 0x317   : > { %v749_v45 = vpop.permute.xlu0 %748 }
 0x318   : > { %v751_v46 = vpop.permute.xlu1 %750  ;;  %v762_v53 = vsel %vm565_vm2, 0.0, %v749_v45 }
 0x319   : > { %v756_v49 = vsel %vm565_vm2, %v749_v45, %v751_v46  ;;  %v764_v59 = vadd.f32 %v762_v53, %v725_v33 }
 0x31a   : > { %v765_v51 = vadd.f32 %v756_v49, %v727_v34 }
 0x31b   : > { %v753_v47 = vpop.permute.xlu0 %752 }
 0x31c   : > { %v755_v48 = vpop.permute.xlu1 %754  ;;  %v763_v60 = vsel %vm565_vm2, 0.0, %v753_v47 }
 0x31d   : > { %v757_v50 = vsel %vm565_vm2, %v753_v47, %v755_v48  ;;  %v766_v7 = vadd.f32 %v763_v60, %v729_v35 }
 0x31e   : > { %v767_v55 = vadd.f32 %v757_v50, %v731_v36 }
 0x328   : > { %v775_v52 = vpop.permute.xlu0 %774 }
 0x329   : > { %v786_v54 = vsel %vm597_vm3, %v775_v52, 0.0 }
 0x32a   : > { %v789_v56 = vadd.f32 %v786_v54, %v765_v51  ;;  %v779_v57 = vpop.permute.xlu1 %778 }
 0x32b   : > { %v787_v58 = vsel %vm597_vm3, %v779_v57, 0.0 }
 0x32c   : > { %v805_v61 = vadd.f32 %v797_v44, %v789_v56  ;;  %v791_v62 = vadd.f32 %v787_v58, %v767_v55  ;;  %v773_v63 = vpop.permute.xlu0 %772 }
 0x32d   : > { %v780_v1 = vsel %vm590_vm4, %v773_v63, %v775_v52 }
 0x32e   : > { %vm809_vm5 = vcmp.ge.f32.partialorder %v805_v61, 0.0  ;;  %v813_v2 = vmul.f32 0.2, %v805_v61  ;;  %v807_v3 = vadd.f32 %v802_v43, %v791_v62  ;;  %v788_v4 = vadd.f32 %v780_v1, %v764_v59  ;;  %v777_v6 = vpop.permute.xlu1 %776 }
 0x32f   : > { %v781_v9 = vsel %vm590_vm4, %v777_v6, %v779_v57 }
 0x330   : > { %v817_v10 = vsel %vm809_vm5, %v805_v61, %v813_v2  ;;  %vm811_vm6 = vcmp.ge.f32.partialorder %v807_v3, 0.0  ;;  %v815_v11 = vmul.f32 0.2, %v807_v3  ;;  %v804_v13 = vadd.f32 %v797_v44, %v788_v4 }
 0x331   : > { %v790_v14 = vadd.f32 %v781_v9, %v766_v7  ;;  %v821_v19 = vsel %vm2259_vm8, %v817_v10, 0.0 }
 0x332   : > { %v819_v17 = vsel %vm811_vm6, %v807_v3, %v815_v11  ;;  %vm808_vm7 = vcmp.ge.f32.partialorder %v804_v13, 0.0  ;;  %v812_v18 = vmul.f32 0.2, %v804_v13 }
 0x333   : > { %v823_v20 = vsel %vm2259_vm8, %v819_v17, 0.0  ;;  %v806_v21 = vadd.f32 %v802_v43, %v790_v14 }
 0x334   : > { %v825_v22 = vpack.c.bf16 %v823_v20, %v821_v19  ;;  %v816_v24 = vsel %vm808_vm7, %v804_v13, %v812_v18 }
 0x335   : > { %vm810_vm9 = vcmp.ge.f32.partialorder %v806_v21, 0.0  ;;  %v814_v27 = vmul.f32 0.2, %v806_v21 }
 0x336   : > { %827 = vst.msk [vmem:[#allocation2 + $0x38] sm:$0xff] %vm437_vm0, %v825_v22 }
 0x337   : > { %v818_v28 = vsel %vm810_vm9, %v806_v21, %v814_v27 }
 0x338   : > { %v1824_v31 = vpack.c.bf16 %v818_v28, %v816_v24 }
 0x33d   : > { %v835_v29 = vld [vmem:[#allocation2 + $0x38] sm:$0xff]  ;;  %v983_v42 = vpop.permute.xlu0 %982 }
 0x33e   : > { %873 = vmatprep.subr.bf16.mxu1 %v835_v29  ;;  %1281 = vmatprep.subr.bf16.mxu0 %v835_v29 }
 0x33f   : > { %1825 = vmatpush1.bf16.msk.msra.mxu1 %vm2275_vm15, %v1824_v31  ;;  %1828 = vmatpush1.bf16.msk.msra.mxu0 %vm2275_vm15, %v1824_v31  ;;  %v988_v43 = vpop.permute.xlu1 %987 }
 0x340   : > { %1055 = vmatprep.subr.bf16.mxu1 %v2205_v15 }
 0x342   : > { %1673 = vmatmul.mubr.msk.bf16.vlgmr.msra.gmra.mrb[12].mxu1 %vm857_vm10, %v1794_v30 }
 0x343   : > { %1056 = vmatpush1.bf16.msra.mxu1 %v2191_v8  ;;  %909 = vmatprep.mubr.bf16.mxu1 %v1977_v0  ;;  %v1796_v8 = vld [vmem:[%s2592_s5 + $0x10] sm:$0xff]  }
 0x344   : > { %1057 = vmatprep.subr.bf16.mxu1 %v2208_v16 }
 0x347   : > { %1058 = vmatpush1.bf16.msra.mxu1 %v2196_v12 }
 0x348   : > { %1059 = vmatprep.subr.bf16.mxu1 %v2268_v23 }
 0x34a   : > { %1674 = vmatmul.mubr.msk.bf16.gmra.mrb[16].mxu1 %vm857_vm10, %v1795_v32  ;;  %v1799_v32 = vld [vmem:[%s2629_s25 + $0x10] sm:$0xff]  }
 0x34b   : > { %1831 = vmatpush1.bf16.msk.msra.mxu1 %vm2275_vm15, %v2279_v26  ;;  %919 = vmatprep.mubr.bf16.mxu1 %v1977_v0 }
 0x34c   : > { %1061 = vmatprep.subr.bf16.mxu1 %v835_v29  ;;  %v1797_v29 = vld [vmem:[%s2629_s25] sm:$0xff]  }
 0x34f   : > { %1834 = vmatpush1.bf16.msk.msra.mxu1 %vm2275_vm15, %v1824_v31  ;;  %v1798_v31 = vld [vmem:[%s2629_s25 + $0x8] sm:$0xff]  }
 0x352   : > { %1675 = vmatmul.mubr.msk.bf16.gmra.mrb[20].mxu1 %vm857_vm10, %v1796_v8  ;;  %vm1256_vm10 = vcmask 785408  }
 0x353   : > { %1087 = vmatprep.mubr.bf16.mxu1 %v1977_v0 }
 0x415   : > { %v901_v12 = vpop.f32.mrb[12].mxu1 }
 0x416   : > { %934 = vrot.lane.b32.xlu0 %v901_v12, %s1978_s8  ;;  %v903_v15 = vpop.f32.mrb[13].mxu1 }
 0x417   : > { %936 = vrot.lane.b32.xlu1 %v903_v15, %s1978_s8  ;;  %v905_v16 = vpop.f32.mrb[14].mxu1 }
 0x418   : > { %v907_v23 = vpop.f32.mrb[15].mxu1 }
 0x41a   : > { %938 = vrot.lane.b32.xlu0 %v905_v16, %s1978_s8 }
 0x41b   : > { %940 = vrot.lane.b32.xlu1 %v907_v23, %s1978_s8 }
 0x41d   : > { %v911_v26 = vpop.f32.mrb[16].mxu1 }
 0x41e   : > { %v913_v33 = vpop.f32.mrb[17].mxu1 }
 0x41f   : > { %v915_v34 = vpop.f32.mrb[18].mxu1 }
 0x420   : > { %v917_v35 = vpop.f32.mrb[19].mxu1 }
 0x425   : > { %v921_v36 = vpop.f32.mrb[20].mxu1 }
 0x426   : > { %v923_v37 = vpop.f32.mrb[21].mxu1 }
 0x427   : > { %960 = vrot.lane.b32.xlu0 %v923_v37, %s1979_s21  ;;  %v925_v38 = vpop.f32.mrb[22].mxu1 }
 0x428   : > { %v927_v39 = vpop.f32.mrb[23].mxu1 }
 0x429   : > { %964 = vrot.lane.b32.xlu1 %v927_v39, %s1979_s21  ;;  %v1464_v39 = vld [vmem:[%s2630_s29] sm:$0xff] }
 0x42b   : > { %958 = vrot.lane.b32.xlu0 %v921_v36, %s1979_s21 }
 0x42d   : > { %962 = vrot.lane.b32.xlu1 %v925_v38, %s1979_s21 }
 0x42f   : > { %1170 = vperm.xlu0 %1786, %v1166_v40   ;;  %v1465_v40 = vld [vmem:[%s2630_s29 + $0x8] sm:$0xff] }
 0x431   : > { %1175 = vperm.xlu1 %1787, %v1167_v41   ;;  %v1466_v41 = vld [vmem:[%s2630_s29 + $0x10] sm:$0xff] }
 0x488   : > { %v935_v44 = vpop.permute.xlu0 %934 }
 0x489   : > { %v937_v45 = vpop.permute.xlu1 %936  ;;  %v948_v52 = vsel %vm565_vm2, 0.0, %v935_v44 }
 0x48a   : > { %v942_v48 = vsel %vm565_vm2, %v935_v44, %v937_v45  ;;  %v950_v58 = vadd.f32 %v948_v52, %v911_v26 }
 0x48b   : > { %v951_v50 = vadd.f32 %v942_v48, %v913_v33 }
 0x48c   : > { %v939_v46 = vpop.permute.xlu0 %938 }
 0x48d   : > { %v941_v47 = vpop.permute.xlu1 %940  ;;  %v949_v59 = vsel %vm565_vm2, 0.0, %v939_v46 }
 0x48e   : > { %v943_v49 = vsel %vm565_vm2, %v939_v46, %v941_v47  ;;  %v952_v6 = vadd.f32 %v949_v59, %v915_v34 }
 0x48f   : > { %v953_v54 = vadd.f32 %v943_v49, %v917_v35 }
 0x499   : > { %v961_v51 = vpop.permute.xlu0 %960 }
 0x49a   : > { %v972_v53 = vsel %vm597_vm3, %v961_v51, 0.0 }
 0x49b   : > { %v975_v55 = vadd.f32 %v972_v53, %v951_v50  ;;  %v965_v56 = vpop.permute.xlu1 %964 }
 0x49c   : > { %v973_v57 = vsel %vm597_vm3, %v965_v56, 0.0 }
 0x49d   : > { %v991_v60 = vadd.f32 %v983_v42, %v975_v55  ;;  %v977_v61 = vadd.f32 %v973_v57, %v953_v54  ;;  %v959_v62 = vpop.permute.xlu0 %958 }
 0x49e   : > { %v966_v63 = vsel %vm590_vm4, %v959_v62, %v961_v51 }
 0x49f   : > { %vm995_vm11 = vcmp.ge.f32.partialorder %v991_v60, 0.0  ;;  %v999_v1 = vmul.f32 0.2, %v991_v60  ;;  %v993_v2 = vadd.f32 %v988_v43, %v977_v61  ;;  %v974_v3 = vadd.f32 %v966_v63, %v950_v58  ;;  %v963_v4 = vpop.permute.xlu1 %962 }
 0x4a0   : > { %v967_v7 = vsel %vm590_vm4, %v963_v4, %v965_v56 }
 0x4a1   : > { %v1003_v9 = vsel %vm995_vm11, %v991_v60, %v999_v1  ;;  %vm997_vm12 = vcmp.ge.f32.partialorder %v993_v2, 0.0  ;;  %v1001_v10 = vmul.f32 0.2, %v993_v2  ;;  %v990_v11 = vadd.f32 %v983_v42, %v974_v3  ;;  %v1467_v42 = vld [vmem:[%s2630_s29 + $0x18] sm:$0xff] }
 0x4a2   : > { %v976_v13 = vadd.f32 %v967_v7, %v952_v6  ;;  %v1007_v18 = vsel %vm2259_vm8, %v1003_v9, 0.0 }
 0x4a3   : > { %v1005_v14 = vsel %vm997_vm12, %v993_v2, %v1001_v10  ;;  %vm994_vm13 = vcmp.ge.f32.partialorder %v990_v11, 0.0  ;;  %v998_v17 = vmul.f32 0.2, %v990_v11 }
 0x4a4   : > { %v1009_v19 = vsel %vm2259_vm8, %v1005_v14, 0.0  ;;  %v992_v20 = vadd.f32 %v988_v43, %v976_v13 }
 0x4a5   : > { %v1011_v21 = vpack.c.bf16 %v1009_v19, %v1007_v18  ;;  %v1002_v22 = vsel %vm994_vm13, %v990_v11, %v998_v17 }
 0x4a6   : > { %vm996_vm14 = vcmp.ge.f32.partialorder %v992_v20, 0.0  ;;  %v1000_v24 = vmul.f32 0.2, %v992_v20 }
 0x4a7   : > { %1013 = vst.msk [vmem:[#allocation2 + $0x48] sm:$0xff] %vm437_vm0, %v1011_v21 }
 0x4a8   : > { %v1004_v27 = vsel %vm996_vm14, %v992_v20, %v1000_v24 }
 0x4a9   : > { %v1836_v30 = vpack.c.bf16 %v1004_v27, %v1002_v22 }
 0x4ae   : > { %v1023_v28 = vld [vmem:[#allocation2 + $0x48] sm:$0xff]  ;;  %v1171_v43 = vpop.permute.xlu0 %1170 }
 0x4af   : > { %1063 = vmatprep.subr.bf16.mxu1 %v1023_v28  ;;  %1283 = vmatprep.subr.bf16.mxu0 %v1023_v28 }
 0x4b0   : > { %1837 = vmatpush1.bf16.msk.msra.mxu1 %vm2275_vm15, %v1836_v30  ;;  %1840 = vmatpush1.bf16.msk.msra.mxu0 %vm2275_vm15, %v1836_v30  ;;  %v1176_v44 = vpop.permute.xlu1 %1175  ;;  %v1800_v30 = vld [vmem:[%s2631_s9] sm:$0xff]  }
 0x4b3   : > { %1679 = vmatmul.mubr.msk.bf16.vlgmr.msra.gmra.mrb[24].mxu1 %vm1045_vm1, %v1797_v29 }
 0x4b4   : > { %1097 = vmatprep.mubr.bf16.mxu1 %v1977_v0 }
 0x4bb   : > { %1680 = vmatmul.mubr.msk.bf16.gmra.mrb[28].mxu1 %vm1045_vm1, %v1798_v31 }
 0x4bc   : > { %1107 = vmatprep.mubr.bf16.mxu1 %v1977_v0 }
 0x4c3   : > { %1681 = vmatmul.mubr.msk.bf16.gmra.mrb[32].mxu1 %vm1045_vm1, %v1799_v32  ;;  %v1802_v32 = vld [vmem:[%s2631_s9 + $0x10] sm:$0xff]  }
 0x586   : > { %v1089_v8 = vpop.f32.mrb[24].mxu1 }
 0x587   : > { %1122 = vrot.lane.b32.xlu0 %v1089_v8, %s1978_s8  ;;  %v1091_v12 = vpop.f32.mrb[25].mxu1  ;;  %v1804_v8 = vld [vmem:[%s2631_s9 + $0x20] sm:$0xff]  }
 0x588   : > { %1124 = vrot.lane.b32.xlu1 %v1091_v12, %s1978_s8  ;;  %v1093_v15 = vpop.f32.mrb[26].mxu1  ;;  %v1805_v12 = vld [vmem:[%s2631_s9 + $0x28] sm:$0xff]  }
 0x589   : > { %v1095_v16 = vpop.f32.mrb[27].mxu1 }
 0x58b   : > { %1126 = vrot.lane.b32.xlu0 %v1093_v15, %s1978_s8 }
 0x58c   : > { %1128 = vrot.lane.b32.xlu1 %v1095_v16, %s1978_s8 }
 0x58e   : > { %v1099_v23 = vpop.f32.mrb[28].mxu1 }
 0x58f   : > { %v1101_v26 = vpop.f32.mrb[29].mxu1 }
 0x590   : > { %v1103_v33 = vpop.f32.mrb[30].mxu1 }
 0x591   : > { %v1105_v34 = vpop.f32.mrb[31].mxu1 }
 0x596   : > { %v1109_v35 = vpop.f32.mrb[32].mxu1 }
 0x597   : > { %v1111_v36 = vpop.f32.mrb[33].mxu1 }
 0x598   : > { %1148 = vrot.lane.b32.xlu0 %v1111_v36, %s1979_s21  ;;  %v1113_v37 = vpop.f32.mrb[34].mxu1 }
 0x599   : > { %v1115_v38 = vpop.f32.mrb[35].mxu1 }
 0x59a   : > { %1152 = vrot.lane.b32.xlu1 %v1115_v38, %s1979_s21 }
 0x59c   : > { %1146 = vrot.lane.b32.xlu0 %v1109_v35, %s1979_s21 }
 0x59e   : > { %1150 = vrot.lane.b32.xlu1 %v1113_v37, %s1979_s21 }
 0x5a0   : > { %1470 = vperm.xlu0 %1786, %v1464_v39  }
 0x5a2   : > { %1475 = vperm.xlu1 %1787, %v1465_v40  }
 0x5a4   : > { %1480 = vperm.xlu0 %1786, %v1466_v41  }
 0x5a6   : > { %1485 = vperm.xlu1 %1787, %v1467_v42  }
 0x5f9   : > { %v1123_v45 = vpop.permute.xlu0 %1122 }
 0x5fa   : > { %v1125_v46 = vpop.permute.xlu1 %1124  ;;  %v1136_v53 = vsel %vm565_vm2, 0.0, %v1123_v45 }
 0x5fb   : > { %v1130_v49 = vsel %vm565_vm2, %v1123_v45, %v1125_v46  ;;  %v1138_v59 = vadd.f32 %v1136_v53, %v1099_v23 }
 0x5fc   : > { %v1139_v51 = vadd.f32 %v1130_v49, %v1101_v26 }
 0x5fd   : > { %v1127_v47 = vpop.permute.xlu0 %1126 }
 0x5fe   : > { %v1129_v48 = vpop.permute.xlu1 %1128  ;;  %v1137_v60 = vsel %vm565_vm2, 0.0, %v1127_v47 }
 0x5ff   : > { %v1131_v50 = vsel %vm565_vm2, %v1127_v47, %v1129_v48  ;;  %v1140_v7 = vadd.f32 %v1137_v60, %v1103_v33 }
 0x600   : > { %v1141_v55 = vadd.f32 %v1131_v50, %v1105_v34 }
 0x60a   : > { %v1149_v52 = vpop.permute.xlu0 %1148 }
 0x60b   : > { %v1160_v54 = vsel %vm597_vm3, %v1149_v52, 0.0 }
 0x60c   : > { %v1163_v56 = vadd.f32 %v1160_v54, %v1139_v51  ;;  %v1153_v57 = vpop.permute.xlu1 %1152 }
 0x60d   : > { %v1161_v58 = vsel %vm597_vm3, %v1153_v57, 0.0 }
 0x60e   : > { %v1179_v61 = vadd.f32 %v1171_v43, %v1163_v56  ;;  %v1165_v62 = vadd.f32 %v1161_v58, %v1141_v55  ;;  %v1147_v63 = vpop.permute.xlu0 %1146 }
 0x60f   : > { %v1154_v1 = vsel %vm590_vm4, %v1147_v63, %v1149_v52 }
 0x610   : > { %vm1183_vm5 = vcmp.ge.f32.partialorder %v1179_v61, 0.0  ;;  %v1187_v2 = vmul.f32 0.2, %v1179_v61  ;;  %v1181_v3 = vadd.f32 %v1176_v44, %v1165_v62  ;;  %v1162_v4 = vadd.f32 %v1154_v1, %v1138_v59  ;;  %v1151_v6 = vpop.permute.xlu1 %1150 }
 0x611   : > { %v1155_v9 = vsel %vm590_vm4, %v1151_v6, %v1153_v57 }
 0x612   : > { %v1191_v10 = vsel %vm1183_vm5, %v1179_v61, %v1187_v2  ;;  %vm1185_vm6 = vcmp.ge.f32.partialorder %v1181_v3, 0.0  ;;  %v1189_v11 = vmul.f32 0.2, %v1181_v3  ;;  %v1178_v13 = vadd.f32 %v1171_v43, %v1162_v4 }
 0x613   : > { %v1164_v14 = vadd.f32 %v1155_v9, %v1140_v7  ;;  %v1195_v19 = vsel %vm2259_vm8, %v1191_v10, 0.0 }
 0x614   : > { %v1193_v17 = vsel %vm1185_vm6, %v1181_v3, %v1189_v11  ;;  %vm1182_vm7 = vcmp.ge.f32.partialorder %v1178_v13, 0.0  ;;  %v1186_v18 = vmul.f32 0.2, %v1178_v13 }
 0x615   : > { %v1197_v20 = vsel %vm2259_vm8, %v1193_v17, 0.0  ;;  %v1180_v21 = vadd.f32 %v1176_v44, %v1164_v14 }
 0x616   : > { %v1199_v22 = vpack.c.bf16 %v1197_v20, %v1195_v19  ;;  %v1190_v24 = vsel %vm1182_vm7, %v1178_v13, %v1186_v18 }
 0x617   : > { %vm1184_vm9 = vcmp.ge.f32.partialorder %v1180_v21, 0.0  ;;  %v1188_v27 = vmul.f32 0.2, %v1180_v21 }
 0x618   : > { %1201 = vst.msk [vmem:[#allocation2 + $0x58] sm:$0xff] %vm437_vm0, %v1199_v22  ;;  %vm1528_vm0 = vcmask 982016  }
 0x619   : > { %v1192_v28 = vsel %vm1184_vm9, %v1180_v21, %v1188_v27 }
 0x61a   : > { %v1842_v31 = vpack.c.bf16 %v1192_v28, %v1190_v24 }
 0x61f   : > { %v1213_v29 = vld [vmem:[#allocation2 + $0x58] sm:$0xff]  ;;  %v1471_v52 = vpop.permute.xlu0 %1470 }
 0x620   : > { %1285 = vmatprep.subr.bf16.mxu0 %v1213_v29 }
 0x621   : > { %1843 = vmatpush1.bf16.msk.msra.mxu0 %vm2275_vm15, %v1842_v31  ;;  %v1476_v53 = vpop.permute.xlu1 %1475 }
 0x623   : > { %v1481_v54 = vpop.permute.xlu0 %1480 }
 0x624   : > { %1688 = vmatmul.mubr.msk.bf16.vlgmr.msra.gmra.mrb[12].mxu0 %vm1256_vm10, %v1800_v30 }
 0x625   : > { %1317 = vmatprep.mubr.bf16.mxu0 %v1977_v0  ;;  %v2483_v55 = vpop.permute.xlu1 %1485 }
 0x62c   : > { %1689 = vmatmul.mubr.msk.bf16.gmra.mrb[16].mxu0 %vm1256_vm10, %v1801_v5 }
 0x62d   : > { %1327 = vmatprep.mubr.bf16.mxu0 %v1977_v0 }
 0x634   : > { %1690 = vmatmul.mubr.msk.bf16.gmra.mrb[20].mxu0 %vm1256_vm10, %v1802_v32  ;;  %v1806_v32 = vld [vmem:[%s2175_s12 + $0x8] sm:$0xff] }
 0x635   : > { %1337 = vmatprep.mubr.bf16.mxu0 %v1977_v0 }
 0x63c   : > { %1691 = vmatmul.mubr.msk.bf16.gmra.mrb[24].mxu0 %vm1256_vm10, %v1803_v25 }
 0x63d   : > { %1347 = vmatprep.mubr.bf16.mxu0 %v1977_v0 }
 0x644   : > { %1692 = vmatmul.mubr.msk.bf16.gmra.mrb[28].mxu0 %vm1256_vm10, %v1804_v8  ;;  %v1807_v8 = vld [vmem:[%s2175_s12] sm:$0xff] }
 0x645   : > { %1357 = vmatprep.mubr.bf16.mxu0 %v1977_v0 }
 0x64c   : > { %1693 = vmatmul.mubr.msk.bf16.gmra.mrb[32].mxu0 %vm1256_vm10, %v1805_v12 }
 0x6f7   : > { %v1309_v15 = vpop.f32.mrb[12].mxu0 }
 0x6f8   : > { %1376 = vrot.lane.b32.xlu0 %v1309_v15, %s1978_s8  ;;  %v1311_v16 = vpop.f32.mrb[13].mxu0 }
 0x6f9   : > { %1378 = vrot.lane.b32.xlu1 %v1311_v16, %s1978_s8  ;;  %v1313_v23 = vpop.f32.mrb[14].mxu0 }
 0x6fa   : > { %v1315_v26 = vpop.f32.mrb[15].mxu0 }
 0x6fc   : > { %1380 = vrot.lane.b32.xlu0 %v1313_v23, %s1978_s8 }
 0x6fd   : > { %1382 = vrot.lane.b32.xlu1 %v1315_v26, %s1978_s8 }
 0x6ff   : > { %v1319_v33 = vpop.f32.mrb[16].mxu0 }
 0x700   : > { %1384 = vrot.lane.b32.xlu0 %v1319_v33, %s1978_s8  ;;  %v1321_v0 = vpop.f32.mrb[17].mxu0 }
 0x701   : > { %1386 = vrot.lane.b32.xlu1 %v1321_v0, %s1978_s8  ;;  %v1323_v34 = vpop.f32.mrb[18].mxu0 }
 0x702   : > { %v1325_v35 = vpop.f32.mrb[19].mxu0 }
 0x704   : > { %1388 = vrot.lane.b32.xlu0 %v1323_v34, %s1978_s8 }
 0x705   : > { %1390 = vrot.lane.b32.xlu1 %v1325_v35, %s1978_s8  ;;  %s1980_s8 = smov 120  }
 0x707   : > { %v1329_v36 = vpop.f32.mrb[20].mxu0 }
 0x708   : > { %v1331_v37 = vpop.f32.mrb[21].mxu0 }
 0x709   : > { %v1333_v38 = vpop.f32.mrb[22].mxu0 }
 0x70a   : > { %v1335_v39 = vpop.f32.mrb[23].mxu0 }
 0x70f   : > { %v1339_v40 = vpop.f32.mrb[24].mxu0 }
 0x710   : > { %v1341_v41 = vpop.f32.mrb[25].mxu0 }
 0x711   : > { %v2471_v42 = vpop.f32.mrb[26].mxu0 }
 0x712   : > { %v2473_v43 = vpop.f32.mrb[27].mxu0 }
 0x717   : > { %v1349_v44 = vpop.f32.mrb[28].mxu0 }
 0x718   : > { %1424 = vrot.lane.b32.xlu0 %v1349_v44, %s1979_s21  ;;  %v1351_v45 = vpop.f32.mrb[29].mxu0  ;;  %v1809_v44 = vld [vmem:[%s2175_s12 + $0x10] sm:$0xff] }
 0x719   : > { %1426 = vrot.lane.b32.xlu1 %v1351_v45, %s1979_s21  ;;  %v1353_v46 = vpop.f32.mrb[30].mxu0 }
 0x71a   : > { %v1355_v47 = vpop.f32.mrb[31].mxu0 }
 0x71c   : > { %1428 = vrot.lane.b32.xlu0 %v1353_v46, %s1979_s21 }
 0x71d   : > { %1430 = vrot.lane.b32.xlu1 %v1355_v47, %s1979_s21 }
 0x71f   : > { %v1359_v48 = vpop.f32.mrb[32].mxu0 }
 0x720   : > { %1432 = vrot.lane.b32.xlu0 %v1359_v48, %s1979_s21  ;;  %v1361_v49 = vpop.f32.mrb[33].mxu0 }
 0x721   : > { %1434 = vrot.lane.b32.xlu1 %v1361_v49, %s1979_s21  ;;  %v1363_v50 = vpop.f32.mrb[34].mxu0 }
 0x722   : > { %v1365_v51 = vpop.f32.mrb[35].mxu0 }
 0x724   : > { %1436 = vrot.lane.b32.xlu0 %v1363_v50, %s1979_s21 }
 0x725   : > { %1438 = vrot.lane.b32.xlu1 %v1365_v51, %s1979_s21  ;;  %s2632_s21 = sld [smem:[#allocation10_spill]] }
 0x72b   : > { %s1695_s7 = sshll.u32 %s2632_s21, 3 }
 0x76a   : > { %v1377_v56 = vpop.permute.xlu0 %1376 }
 0x76b   : > { %v1379_v57 = vpop.permute.xlu1 %1378  ;;  %v1404_v1 = vsel %vm565_vm2, 0.0, %v1377_v56 }
 0x76c   : > { %v1392_v2 = vsel %vm565_vm2, %v1377_v56, %v1379_v57  ;;  %v1408_v4 = vadd.f32 %v1404_v1, %v1329_v36 }
 0x76d   : > { %v1409_v6 = vadd.f32 %v1392_v2, %v1331_v37 }
 0x76e   : > { %v1381_v58 = vpop.permute.xlu0 %1380 }
 0x76f   : > { %v1383_v59 = vpop.permute.xlu1 %1382  ;;  %v1405_v7 = vsel %vm565_vm2, 0.0, %v1381_v58 }
 0x770   : > { %v1393_v10 = vsel %vm565_vm2, %v1381_v58, %v1383_v59  ;;  %v1410_v18 = vadd.f32 %v1405_v7, %v1333_v38  ;;  %v1811_v59 = vld [vmem:[%s2175_s12 + $0x20] sm:$0xff] }
 0x771   : > { %v1411_v20 = vadd.f32 %v1393_v10, %v1335_v39 }
 0x772   : > { %v1385_v60 = vpop.permute.xlu0 %1384 }
 0x773   : > { %v1387_v61 = vpop.permute.xlu1 %1386  ;;  %v1406_v21 = vsel %vm565_vm2, 0.0, %v1385_v60 }
 0x774   : > { %v1394_v28 = vsel %vm565_vm2, %v1385_v60, %v1387_v61  ;;  %v1412_v15 = vadd.f32 %v1406_v21, %v1339_v40  ;;  %v1808_v40 = vld [vmem:[%s2175_s12 + $0x18] sm:$0xff] }
 0x775   : > { %v1413_v23 = vadd.f32 %v1394_v28, %v1341_v41  ;;  %v1812_v61 = vld [vmem:[%s2175_s12 + $0x38] sm:$0xff] }
 0x776   : > { %v1389_v62 = vpop.permute.xlu0 %1388 }
 0x777   : > { %v1391_v63 = vpop.permute.xlu1 %1390  ;;  %v1407_v26 = vsel %vm565_vm2, 0.0, %v1389_v62 }
 0x778   : > { %v1395_v35 = vsel %vm565_vm2, %v1389_v62, %v1391_v63  ;;  %v1414_v46 = vadd.f32 %v1407_v26, %v2471_v42  ;;  %v1810_v42 = vld [vmem:[%s2175_s12 + $0x28] sm:$0xff]  ;;  %v1813_v63 = vld [vmem:[%s2175_s12 + $0x30] sm:$0xff]  ;;  %s1553_s12 = sadd.s32 %s1956_s20, %s1695_s7  ;;  %s1981_s7 = smov [#allocation6]  }
 0x779   : > { %v1415_v48 = vadd.f32 %v1395_v35, %v2473_v43  ;;  %s1696_s16 = sshll.u32 %s1553_s12, 7  ;;  %s1878_s12 = sshll.u32 %s1981_s7, 4  ;;  %s1879_s12 = int_to_ptr.vmem [resolvable:$false] %s1878_s12 }
 0x77a   : > { %s1880_s0 = scalar_lea.vmem %s1879_s12, 1024  ;;  %p1881_p11 = scmp.lt.s32.totalorder %s2527_s26, %s1879_s12 }
 0x77b   : > { %p1882_p13 = scmp.lt.s32.totalorder %s1880_s0, %s1874_s10 }
 0x77d   : > { %p1883_p1 = por %p1882_p13, %p1881_p11 }
 0x77f   : > { %p1884_p3 = pnand %p1883_p1, %p1877_p0 }
 0x78a   : > { %v1425_v3 = vpop.permute.xlu0 %1424 }
 0x78b   : > { %v1427_v9 = vpop.permute.xlu1 %1426 }
 0x78c   : > { %v1440_v11 = vsel %vm590_vm4, %v1425_v3, %v1427_v9  ;;  %v1452_v13 = vsel %vm597_vm3, %v1427_v9, 0.0 }
 0x78d   : > { %v1456_v14 = vadd.f32 %v1440_v11, %v1408_v4  ;;  %v1457_v17 = vadd.f32 %v1452_v13, %v1409_v6 }
 0x78e   : > { %v1429_v19 = vpop.permute.xlu0 %1428 }
 0x78f   : > { %v1488_v22 = vadd.f32 %v1471_v52, %v1456_v14  ;;  %v1489_v24 = vadd.f32 %v1471_v52, %v1457_v17  ;;  %v1431_v27 = vpop.permute.xlu1 %1430 }
 0x790   : > { %v1441_v29 = vsel %vm590_vm4, %v1429_v19, %v1431_v27  ;;  %v1453_v30 = vsel %vm597_vm3, %v1431_v27, 0.0 }
 0x791   : > { %v1458_v31 = vadd.f32 %v1441_v29, %v1410_v18  ;;  %v1459_v5 = vadd.f32 %v1453_v30, %v1411_v20  ;;  %v1497_v25 = vadd.f32 %v1806_v32, %v1489_v24  ;;  %v1496_v12 = vadd.f32 %v1807_v8, %v1488_v22 }
 0x792   : > { %v1433_v16 = vpop.permute.xlu0 %1432 }
 0x793   : > { %v1490_v33 = vadd.f32 %v1476_v53, %v1458_v31  ;;  %v1491_v0 = vadd.f32 %v1476_v53, %v1459_v5  ;;  %1514 = vrot.lane.b32.xlu1 %v1497_v25, %s1980_s8  ;;  %1512 = vrot.lane.b32.xlu0 %v1496_v12, %s1980_s8  ;;  %v1435_v34 = vpop.permute.xlu1 %1434 }
 0x794   : > { %v1442_v36 = vsel %vm590_vm4, %v1433_v16, %v1435_v34  ;;  %v1454_v37 = vsel %vm597_vm3, %v1435_v34, 0.0 }
 0x795   : > { %v1460_v38 = vadd.f32 %v1442_v36, %v1412_v15  ;;  %v1461_v39 = vadd.f32 %v1454_v37, %v1413_v23  ;;  %v1499_v41 = vadd.f32 %v1808_v40, %v1491_v0  ;;  %v1498_v45 = vadd.f32 %v1809_v44, %v1490_v33 }
 0x796   : > { %v1437_v47 = vpop.permute.xlu0 %1436 }
 0x797   : > { %v1492_v49 = vadd.f32 %v1481_v54, %v1460_v38  ;;  %v1493_v50 = vadd.f32 %v1481_v54, %v1461_v39  ;;  %1518 = vrot.lane.b32.xlu1 %v1499_v41, %s1980_s8  ;;  %1516 = vrot.lane.b32.xlu0 %v1498_v45, %s1980_s8  ;;  %v1439_v51 = vpop.permute.xlu1 %1438 }
 0x798   : > { %v1443_v52 = vsel %vm590_vm4, %v1437_v47, %v1439_v51  ;;  %v1455_v53 = vsel %vm597_vm3, %v1439_v51, 0.0 }
 0x799   : > { %v1462_v56 = vadd.f32 %v1443_v52, %v1414_v46  ;;  %v1463_v57 = vadd.f32 %v1455_v53, %v1415_v48  ;;  %v1501_v58 = vadd.f32 %v1810_v42, %v1493_v50  ;;  %v1500_v43 = vadd.f32 %v1811_v59, %v1492_v49 }
 0x79b   : > { %v1494_v54 = vadd.f32 %v2483_v55, %v1462_v56  ;;  %v1495_v60 = vadd.f32 %v2483_v55, %v1463_v57  ;;  %1522 = vrot.lane.b32.xlu1 %v1501_v58, %s1980_s8  ;;  %1520 = vrot.lane.b32.xlu0 %v1500_v43, %s1980_s8 }
 0x79d   : > { %v1503_v62 = vadd.f32 %v1812_v61, %v1495_v60  ;;  %v1502_v1 = vadd.f32 %v1813_v63, %v1494_v54 }
 0x79f   : > { %1526 = vrot.lane.b32.xlu1 %v1503_v62, %s1980_s8  ;;  %1524 = vrot.lane.b32.xlu0 %v1502_v1, %s1980_s8  ;;  %s2633_s8 = sld [smem:[#allocation18_spill]] }
 0x7a5   : > { %s2532_s21 = scalar_lea.hbm %s2633_s8, %s1696_s16 }
 0x805   : > { %v1513_v2 = vpop.permute.xlu0 %1512  ;;  %v1515_v3 = vpop.permute.xlu1 %1514 }
 0x806   : > { %v1529_v55 = vsel %vm1528_vm0, %v1513_v2, %v1515_v3 }
 0x807   : > { %1537 = vst [vmem:[%s422_s28] sm:$0xff] %v1529_v55 }
 0x809   : > { %v1517_v4 = vpop.permute.xlu0 %1516  ;;  %v1519_v6 = vpop.permute.xlu1 %1518 }
 0x80a   : > { %v1530_v7 = vsel %vm1528_vm0, %v1517_v4, %v1519_v6 }
 0x80b   : > { %1538 = vst [vmem:[%s422_s28 + $0x8] sm:$0xff] %v1530_v7 }
 0x80d   : > { %v1521_v9 = vpop.permute.xlu0 %1520  ;;  %v1523_v10 = vpop.permute.xlu1 %1522 }
 0x80e   : > { %v1531_v11 = vsel %vm1528_vm0, %v1521_v9, %v1523_v10 }
 0x80f   : > { %1539 = vst [vmem:[%s422_s28 + $0x10] sm:$0xff] %v1531_v11 }
 0x811   : > { %v1525_v13 = vpop.permute.xlu0 %1524  ;;  %v1527_v14 = vpop.permute.xlu1 %1526 }
 0x812   : > { %v1532_v17 = vsel %vm1528_vm0, %v1525_v13, %v1527_v14 }
 0x813   : > { %1540 = vst [vmem:[%s422_s28 + $0x18] sm:$0xff] %v1532_v17 }
 0x814   : > { %1887 = shalt.err (!%p1884_p3)
}
 0x815   : > { %s1888_s28 = scalar_lea.hbm %s2532_s21, 512  ;;  %s1892_s15 = scalar_lea.hbm %s2633_s8, 2048 }
 0x816   : > { %p1889_p5 = scmp.ne.s32.totalorder %s2532_s21, %s1888_s28  ;;  %p1893_p2 = scmp.lt.u32.totalorder %s2532_s21, %s2633_s8 }
 0x817   : > { %p1894_p4 = scmp.lt.u32.totalorder %s1892_s15, %s1888_s28  ;;  %p1896_p8 = scmp.lt.u32.totalorder %s1888_s28, %s2532_s21 }
 0x818   : > { %p1890_p6 = pnand %p1889_p5, %p2634_p9 }
 0x819   : > { %p1895_p10 = por %p1894_p4, %p1893_p2 }
 0x81a   : > { %p1891_p7 = pneg %p1890_p6 }
 0x81b   : > { %p1897_p12 = por %p1896_p8, %p1895_p10 }
 0x81d   : > { %p1898_p0 = pnand %p1897_p12, %p1891_p7 }
 0x81f   : > { %1901 = shalt.err (!%p1898_p0)
}
 0x820   : > { %s1982_s0 = smov 128   ;;  %s1983_s10 = smov 256  }
 0x821   : > { %s1984_s20 = smov 8   ;;  %s2635_s16 = scalar_lea.sflag [#allocation5], %s2171_s11 }
 0x822   : > { %1701 = dma.vmem_to_hbm [thread:$0]  (%p2634_p9), %s2527_s26, 512, %s2532_s21, %s2635_s16, %s1982_s0, %s1983_s10, %s1984_s20  }
 0x823 PF: > { %s2636_s30 = sld [smem:[#allocation9_spill]]  ;;  %p1712_p11 = scmp.ge.s32.totalorder %s1972_s24, 2 }
 0x824   : > { %p2637_p13 = scmp.ne.s32.totalorder %s2621_s27, 0 }
 0x826   : > { %p1708_p1 = pnand %p1712_p11, %p2637_p13 }
 0x829   : > { %s1571_s15 = sand.u32 1, %s2636_s30  }
 0x82a   : > { %s1572_s28 = scalar_lea.sflag [#allocation5], %s1571_s15 }
 0x82b   : > { %1939 = dma.done.wait (!%p1708_p1), %s1572_s28, 512  }
 0x82c   : > { %1941 = vsyncadd (!%p1708_p1), %s1572_s28, 4294966784  ;;  %s27_s24 = sadd.s32 1, %s1972_s24   ;;  %s2638_s7 = smov %s2123_s17 }
 0x82d   : > { %p24_p3 = scmp.ge.s32.totalorder %s27_s24, 6   ;;  %s2639_s14 = sld [smem:[#allocation11_spill]] }
 0x82e   : > { %s2640_s11 = sld [smem:[#allocation12_spill]]  ;;  %s2641_s17 = smov %s1948_s18 }
 0x82f   : > { %s2642_s18 = smov %s1952_s19  ;;  %s2643_s19 = smov %s2638_s7 }
 0x830   : > { %s2644_s20 = smov %s1964_s22  ;;  %s2645_s21 = smov %s1968_s23 }
 0x831   :  { %26 = sbr.rel (!%p24_p3) target bundleno = 14 (0xe), region = 109 }
 0x833   : > { %s2646_s22 = smov %s2639_s14 }
 0x834   : > { %s2647_s23 = smov %s2640_s11 }
 0x838   :  { %1577 = vsyncpa [#allocation4], 1 }
 0x839   :  { %1579 = vsyncpa [#allocation4 + $0x1], 1 }
 0x83a   :  { %1580 = vsyncpa [#allocation5], 1 }
 0x83b   :  { %1582 = vsyncpa [#allocation5 + $0x1], 1 }

</bundles_post_ra>
